<compile_context>
chip_gen: v6e
topology: v6e:2x2x1
jax: 0.10.0
libtpu: 0.0.40
codegen_flags: <defaults>
</compile_context>

<pallas_src>
import math

import jax
import jax.numpy as jnp
from jax.experimental import pallas as pl
from jax.experimental.pallas import tpu as pltpu


def _ceil_to(n, m):
    return ((n + m - 1) // m) * m


# -----------------------------------------------------------------------------
# Kernel factory
# -----------------------------------------------------------------------------
def make_fused_gru_kernel(T, B, Din, H, L, O, off):
    H2, H3, H4 = 2 * H, 3 * H, 4 * H
    n_bias_rows = 2 * L + 1

    def kernel(x_ref, h0_ref, slab_ref, out_ref):
        # ---- one-time, loop-invariant parameter loads (static VMEM slices,
        #      off the recurrence critical path) --------------------------------
        wih0 = slab_ref[off["wih0"]:off["wih0"] + Din, :]             # (Din, 4H)
        whh0 = slab_ref[off["whh0"]:off["whh0"] + H, :]               # (H, 4H)
        wcat = [slab_ref[off[f"wcat{l}"]:off[f"wcat{l}"] + 2 * H, :]
                for l in range(1, L)]                                 # (2H, 4H)
        wout = slab_ref[off["wout"]:off["wout"] + H, :O]              # (H, O)
        biases = slab_ref[off["bias"]:off["bias"] + n_bias_rows, :]   # (2L+1, 4H)
        b_sum = [biases[2 * l:2 * l + 1, :] + biases[2 * l + 1:2 * l + 2, :]
                 for l in range(L)]                                   # (1, 4H) each
        b_out = biases[2 * L:2 * L + 1, :O]                           # (1, O)

        # ---- hoisted layer-0 input projection for ALL timesteps --------------
        # (includes b_ih + b_hh for layer 0 via b_sum[0]; the hidden matmul
        #  below then only adds h @ Whh0 with its n-gate block in [3H:4H).)
        gi0_all = (jnp.dot(x_ref[...], wih0,
                           preferred_element_type=jnp.float32) + b_sum[0])
        # Pre-slice per-step chunks so the B=2 sublane extracts are scheduled
        # off the serial chain.
        gi0 = [gi0_all[t * B:(t + 1) * B, :] for t in range(T)]

        h = [h0_ref[l] for l in range(L)]                             # (B, H) each

        def apply_gates(u, h_prev):
            # u: (B, 4H) pre-activations [r | z | n_x | n_h], biases included.
            rz = jax.nn.sigmoid(u[:, :H2])          # merged r/z sigmoid
            r = rz[:, :H]
            z = rz[:, H:H2]
            n = jnp.tanh(u[:, H2:H3] + r * u[:, H3:H4])
            return (1.0 - z) * n + z * h_prev

        # ---- wavefront over (time, layer): wave w -> layer l computes t=w-l --
        for w in range(T + L - 1):
            h_old = list(h)                          # snapshot: wave-consistent reads
            u = {}
            # Issue all matmuls of this wave first (independent -> MXU overlap).
            for l in range(L):
                t = w - l
                if 0 <= t < T:
                    if l == 0:
                        u[l] = gi0[t] + jnp.dot(
                            h_old[0], whh0, preferred_element_type=jnp.float32)
                    else:
                        xh = jnp.concatenate([h_old[l - 1], h_old[l]], axis=1)
                        u[l] = jnp.dot(
                            xh, wcat[l - 1],
                            preferred_element_type=jnp.float32) + b_sum[l]
            # Then gates + state updates.
            for l, ul in u.items():
                h[l] = apply_gates(ul, h_old[l])

        # Dropout(0.2): eval-mode identity.  Final Linear on output[:, -1, :].
        out_ref[...] = (jnp.dot(h[L - 1], wout,
                                preferred_element_type=jnp.float32) + b_out)

    return kernel


# -----------------------------------------------------------------------------
# Wrapper: single pallas_call, whole-array VMEM specs, cost estimate.
# -----------------------------------------------------------------------------
def make_gru_forward(T, B, Din, H, L, O, off):
    kernel = make_fused_gru_kernel(T, B, Din, H, L, O, off)
    vmem = pltpu.MemorySpace.VMEM

    H4 = 4 * H
    flops = (2 * T * B * Din * H4              # hoisted layer-0 input projection
             + T * 2 * B * H * H4              # layer-0 hidden matmuls
             + T * (L - 1) * 2 * B * 2 * H * H4  # fused upper-layer matmuls
             + 2 * B * H * O)                  # output head
    transcendentals = T * L * B * 3 * H        # merged sigmoid (2H) + tanh (H)

    @jax.jit
    def forward(x_btd, h0, slab):
        # Time-major flatten: row t*B + b is (timestep t, batch b).
        x_flat = (jnp.transpose(x_btd, (1, 0, 2))
                  .reshape(T * B, Din).astype(jnp.float32))
        bytes_accessed = 4 * (x_flat.size + h0.size + slab.size + B * O)
        return pl.pallas_call(
            kernel,
            out_shape=jax.ShapeDtypeStruct((B, O), jnp.float32),
            in_specs=[pl.BlockSpec(memory_space=vmem),   # x (T*B, Din)
                      pl.BlockSpec(memory_space=vmem),   # h0 (L, B, H)
                      pl.BlockSpec(memory_space=vmem)],  # param slab
            out_specs=pl.BlockSpec(memory_space=vmem),
            compiler_params=pltpu.CompilerParams(
                vmem_limit_bytes=32 * 1024 * 1024),
            cost_estimate=pl.CostEstimate(
                flops=flops, transcendentals=transcendentals,
                bytes_accessed=bytes_accessed),
        )(x_flat, h0, slab)

    return forward


# -----------------------------------------------------------------------------
# Parameter packing: everything in ONE (rows, 4H) f32 slab, 8-row aligned segs.
# Column layout (lanes): [0:H)=r, [H:2H)=z, [2H:3H)=n_input, [3H:4H)=n_hidden.
# Accepts PyTorch-layout params: weight_ih (3H, Din), weight_hh (3H, H),
# bias_ih/bias_hh (3H,), linear weight (O, H), linear bias (O,).
# -----------------------------------------------------------------------------
def pack_params(layers, w_lin, b_lin, input_size, H, L, O):
    H4 = 4 * H
    segs, off, row = [], {}, 0

    def add(name, mat):
        nonlocal row
        mat = jnp.asarray(mat, jnp.float32)
        r = mat.shape[0]
        rp = _ceil_to(r, 8)
        if rp > r:
            mat = jnp.concatenate(
                [mat, jnp.zeros((rp - r, H4), jnp.float32)], axis=0)
        off[name] = row
        segs.append(mat)
        row += rp

    def in4(w_ih, b_ih):
        din = w_ih.shape[1]
        w = jnp.concatenate([w_ih[0:H].T, w_ih[H:2 * H].T, w_ih[2 * H:3 * H].T,
                             jnp.zeros((din, H), jnp.float32)], axis=1)
        b = jnp.concatenate([b_ih[0:H], b_ih[H:2 * H], b_ih[2 * H:3 * H],
                             jnp.zeros((H,), jnp.float32)])[None, :]
        return w, b

    def hid4(w_hh, b_hh):
        w = jnp.concatenate([w_hh[0:H].T, w_hh[H:2 * H].T,
                             jnp.zeros((H, H), jnp.float32),
                             w_hh[2 * H:3 * H].T], axis=1)
        b = jnp.concatenate([b_hh[0:H], b_hh[H:2 * H],
                             jnp.zeros((H,), jnp.float32),
                             b_hh[2 * H:3 * H]])[None, :]
        return w, b

    bias_rows = []
    wi0, bi0 = in4(layers[0][0], layers[0][2])
    wh0, bh0 = hid4(layers[0][1], layers[0][3])
    add("wih0", wi0)                                   # (Din, 4H)
    add("whh0", wh0)                                   # (H, 4H)
    bias_rows.extend([bi0, bh0])
    for l in range(1, L):
        wil, bil = in4(layers[l][0], layers[l][2])
        whl, bhl = hid4(layers[l][1], layers[l][3])
        add(f"wcat{l}", jnp.concatenate([wil, whl], axis=0))   # (2H, 4H)
        bias_rows.extend([bil, bhl])
    add("wout", jnp.concatenate(
        [w_lin.T, jnp.zeros((H, H4 - O), jnp.float32)], axis=1))  # (H, 4H)
    bias_rows.append(jnp.concatenate(
        [b_lin, jnp.zeros((H4 - O,), jnp.float32)])[None, :])
    add("bias", jnp.concatenate(bias_rows, axis=0))    # (2L+1, 4H)

    slab = jnp.concatenate(segs, axis=0)
    return slab, off


# -----------------------------------------------------------------------------
# Deterministic PyTorch-style init (uniform(-1/sqrt(H), 1/sqrt(H))).
# -----------------------------------------------------------------------------
def init_pytorch_params(key, input_size, H, L, O):
    k = 1.0 / math.sqrt(H)
    layers = []
    for l in range(L):
        din = input_size if l == 0 else H
        key, k1, k2, k3, k4 = jax.random.split(key, 5)
        layers.append((
            jax.random.uniform(k1, (3 * H, din), jnp.float32, -k, k),  # weight_ih
            jax.random.uniform(k2, (3 * H, H), jnp.float32, -k, k),    # weight_hh
            jax.random.uniform(k3, (3 * H,), jnp.float32, -k, k),      # bias_ih
            jax.random.uniform(k4, (3 * H,), jnp.float32, -k, k),      # bias_hh
        ))
    key, k5, k6 = jax.random.split(key, 3)
    w_lin = jax.random.uniform(k5, (O, H), jnp.float32, -k, k)
    b_lin = jax.random.uniform(k6, (O,), jnp.float32, -k, k)
    return layers, w_lin, b_lin, key


# -----------------------------------------------------------------------------
# Pure-JAX reference (PyTorch GRU equations) for an in-script correctness check.
# -----------------------------------------------------------------------------
def gru_reference(x, h0, layers, w_lin, b_lin):
    _, T, _ = x.shape
    H = h0.shape[-1]
    seq = x
    for l, (w_ih, w_hh, b_ih, b_hh) in enumerate(layers):
        hl = h0[l]
        outs = []
        for t in range(T):
            xt = seq[:, t, :]
            gi = xt @ w_ih.T + b_ih
            gh = hl @ w_hh.T + b_hh
            r = jax.nn.sigmoid(gi[:, :H] + gh[:, :H])
            z = jax.nn.sigmoid(gi[:, H:2 * H] + gh[:, H:2 * H])
            n = jnp.tanh(gi[:, 2 * H:] + r * gh[:, 2 * H:])
            hl = (1.0 - z) * n + z * hl
            outs.append(hl)
        seq = jnp.stack(outs, axis=1)
    return seq[:, -1, :] @ w_lin.T + b_lin      # Dropout is eval-mode identity


if __name__ == "__main__":
    batch_size = 2
    seq_len = 8
    input_size = 4
    hidden_size = 32
    num_layers = 2
    output_size = 4

    key = jax.random.PRNGKey(0)
    layers, w_lin, b_lin, key = init_pytorch_params(
        key, input_size, hidden_size, num_layers, output_size)
    slab, offsets = pack_params(layers, w_lin, b_lin,
                                input_size, hidden_size, num_layers, output_size)

    key, kx, kh = jax.random.split(key, 3)
    x = jax.random.normal(kx, (batch_size, seq_len, input_size), jnp.float32)
    # h_0 = torch.randn(num_layers, B, H) in the module -> deterministic here.
    h0 = jax.random.normal(kh, (num_layers, batch_size, hidden_size), jnp.float32)

    forward = make_gru_forward(seq_len, batch_size, input_size, hidden_size,
                               num_layers, output_size, offsets)
    out = jax.block_until_ready(forward(x, h0, slab))

    assert out.shape == (batch_size, output_size)
    assert bool(jnp.all(jnp.isfinite(out)))
    ref = gru_reference(x, h0, layers, w_lin, b_lin)
    err = float(jnp.max(jnp.abs(out - ref)))
    assert err < 1e-3, f"kernel/reference mismatch: max |diff| = {err}"
    print("KERNEL_OK")
</pallas_src>

<mosaic_0001>
module attributes {stable_mosaic.version = 11 : i64} {
  func.func @kernel(%arg0: memref<16x4xf32, #tpu.memory_space<vmem>>, %arg1: memref<2x2x32xf32, #tpu.memory_space<vmem>>, %arg2: memref<144x128xf32, #tpu.memory_space<vmem>>, %arg3: memref<2x4xf32, #tpu.memory_space<vmem>>) attributes {dimension_semantics = [], scalar_prefetch = 0 : i64, scratch_operands = 0 : i64, tpu.core_type = #tpu.core_type<tc>} {
    %c0 = arith.constant 0 : index
    %c0_0 = arith.constant 0 : index
    %0 = vector.load %arg2[%c0, %c0_0] : memref<144x128xf32, #tpu.memory_space<vmem>>, vector<4x128xf32>
    %c8 = arith.constant 8 : index
    %c0_1 = arith.constant 0 : index
    %1 = vector.load %arg2[%c8, %c0_1] : memref<144x128xf32, #tpu.memory_space<vmem>>, vector<32x128xf32>
    %c40 = arith.constant 40 : index
    %c0_2 = arith.constant 0 : index
    %2 = vector.load %arg2[%c40, %c0_2] : memref<144x128xf32, #tpu.memory_space<vmem>>, vector<64x128xf32>
    %c104 = arith.constant 104 : index
    %c0_3 = arith.constant 0 : index
    %3 = vector.load %arg2[%c104, %c0_3] : memref<144x128xf32, #tpu.memory_space<vmem>>, vector<32x4xf32>
    %c136 = arith.constant 136 : index
    %c0_4 = arith.constant 0 : index
    %4 = vector.load %arg2[%c136, %c0_4] : memref<144x128xf32, #tpu.memory_space<vmem>>, vector<5x128xf32>
    %5 = vector.extract_strided_slice %4 {offsets = [0, 0], sizes = [1, 128], strides = [1, 1]} : vector<5x128xf32> to vector<1x128xf32>
    %6 = vector.extract_strided_slice %4 {offsets = [1, 0], sizes = [1, 128], strides = [1, 1]} : vector<5x128xf32> to vector<1x128xf32>
    %7 = arith.addf %5, %6 : vector<1x128xf32>
    %8 = vector.extract_strided_slice %4 {offsets = [2, 0], sizes = [1, 128], strides = [1, 1]} : vector<5x128xf32> to vector<1x128xf32>
    %9 = vector.extract_strided_slice %4 {offsets = [3, 0], sizes = [1, 128], strides = [1, 1]} : vector<5x128xf32> to vector<1x128xf32>
    %10 = arith.addf %8, %9 : vector<1x128xf32>
    %11 = vector.extract_strided_slice %4 {offsets = [4, 0], sizes = [1, 4], strides = [1, 1]} : vector<5x128xf32> to vector<1x4xf32>
    %c0_5 = arith.constant 0 : index
    %c0_6 = arith.constant 0 : index
    %12 = vector.load %arg0[%c0_5, %c0_6] : memref<16x4xf32, #tpu.memory_space<vmem>>, vector<16x4xf32>
    %cst = arith.constant dense<0.000000e+00> : vector<16x128xf32>
    %13 = tpu.matmul %12, %0, %cst {dimension_numbers = #tpu.dot_dimension_numbers<[1], [0], [0], [1], [0, 0, 1, 1], [], []>} : vector<16x4xf32>, vector<4x128xf32>, vector<16x128xf32> -> vector<16x128xf32>
    %14 = vector.broadcast %7 : vector<1x128xf32> to vector<16x128xf32>
    %15 = arith.addf %13, %14 : vector<16x128xf32>
    %16 = vector.extract_strided_slice %15 {offsets = [0, 0], sizes = [2, 128], strides = [1, 1]} : vector<16x128xf32> to vector<2x128xf32>
    %17 = vector.extract_strided_slice %15 {offsets = [2, 0], sizes = [2, 128], strides = [1, 1]} : vector<16x128xf32> to vector<2x128xf32>
    %18 = vector.extract_strided_slice %15 {offsets = [4, 0], sizes = [2, 128], strides = [1, 1]} : vector<16x128xf32> to vector<2x128xf32>
    %19 = vector.extract_strided_slice %15 {offsets = [6, 0], sizes = [2, 128], strides = [1, 1]} : vector<16x128xf32> to vector<2x128xf32>
    %20 = vector.extract_strided_slice %15 {offsets = [8, 0], sizes = [2, 128], strides = [1, 1]} : vector<16x128xf32> to vector<2x128xf32>
    %21 = vector.extract_strided_slice %15 {offsets = [10, 0], sizes = [2, 128], strides = [1, 1]} : vector<16x128xf32> to vector<2x128xf32>
    %22 = vector.extract_strided_slice %15 {offsets = [12, 0], sizes = [2, 128], strides = [1, 1]} : vector<16x128xf32> to vector<2x128xf32>
    %23 = vector.extract_strided_slice %15 {offsets = [14, 0], sizes = [2, 128], strides = [1, 1]} : vector<16x128xf32> to vector<2x128xf32>
    %c0_7 = arith.constant 0 : index
    %c0_8 = arith.constant 0 : index
    %c0_9 = arith.constant 0 : index
    %24 = vector.load %arg1[%c0_7, %c0_8, %c0_9] : memref<2x2x32xf32, #tpu.memory_space<vmem>>, vector<1x2x32xf32>
    %25 = vector.shape_cast %24 : vector<1x2x32xf32> to vector<2x32xf32>
    %c1 = arith.constant 1 : index
    %c0_10 = arith.constant 0 : index
    %c0_11 = arith.constant 0 : index
    %26 = vector.load %arg1[%c1, %c0_10, %c0_11] : memref<2x2x32xf32, #tpu.memory_space<vmem>>, vector<1x2x32xf32>
    %27 = vector.shape_cast %26 : vector<1x2x32xf32> to vector<2x32xf32>
    %cst_12 = arith.constant dense<0.000000e+00> : vector<2x128xf32>
    %28 = tpu.matmul %25, %1, %cst_12 {dimension_numbers = #tpu.dot_dimension_numbers<[1], [0], [0], [1], [0, 0, 1, 1], [], []>} : vector<2x32xf32>, vector<32x128xf32>, vector<2x128xf32> -> vector<2x128xf32>
    %29 = arith.addf %16, %28 : vector<2x128xf32>
    %30 = vector.extract_strided_slice %29 {offsets = [0, 0], sizes = [2, 64], strides = [1, 1]} : vector<2x128xf32> to vector<2x64xf32>
    %31 = arith.negf %30 : vector<2x64xf32>
    %32 = math.exp %31 : vector<2x64xf32>
    %cst_13 = arith.constant 1.000000e+00 : f32
    %33 = vector.broadcast %cst_13 : f32 to vector<2x64xf32>
    %34 = arith.addf %33, %32 : vector<2x64xf32>
    %35 = arith.divf %33, %34 : vector<2x64xf32>
    %36 = vector.extract_strided_slice %35 {offsets = [0, 0], sizes = [2, 32], strides = [1, 1]} : vector<2x64xf32> to vector<2x32xf32>
    %37 = vector.extract_strided_slice %35 {offsets = [0, 32], sizes = [2, 32], strides = [1, 1]} : vector<2x64xf32> to vector<2x32xf32>
    %38 = vector.extract_strided_slice %29 {offsets = [0, 64], sizes = [2, 32], strides = [1, 1]} : vector<2x128xf32> to vector<2x32xf32>
    %39 = vector.extract_strided_slice %29 {offsets = [0, 96], sizes = [2, 32], strides = [1, 1]} : vector<2x128xf32> to vector<2x32xf32>
    %40 = arith.mulf %36, %39 : vector<2x32xf32>
    %41 = arith.addf %38, %40 : vector<2x32xf32>
    %42 = math.tanh %41 : vector<2x32xf32>
    %cst_14 = arith.constant 1.000000e+00 : f32
    %43 = vector.broadcast %cst_14 : f32 to vector<2x32xf32>
    %44 = arith.subf %43, %37 : vector<2x32xf32>
    %45 = arith.mulf %44, %42 : vector<2x32xf32>
    %46 = arith.mulf %37, %25 : vector<2x32xf32>
    %47 = arith.addf %45, %46 : vector<2x32xf32>
    %cst_15 = arith.constant dense<0.000000e+00> : vector<2x128xf32>
    %48 = tpu.matmul %47, %1, %cst_15 {dimension_numbers = #tpu.dot_dimension_numbers<[1], [0], [0], [1], [0, 0, 1, 1], [], []>} : vector<2x32xf32>, vector<32x128xf32>, vector<2x128xf32> -> vector<2x128xf32>
    %49 = arith.addf %17, %48 : vector<2x128xf32>
    %50 = tpu.concatenate %47, %27 in 1 : vector<2x32xf32>, vector<2x32xf32> -> vector<2x64xf32>
    %cst_16 = arith.constant dense<0.000000e+00> : vector<2x128xf32>
    %51 = tpu.matmul %50, %2, %cst_16 {dimension_numbers = #tpu.dot_dimension_numbers<[1], [0], [0], [1], [0, 0, 1, 1], [], []>} : vector<2x64xf32>, vector<64x128xf32>, vector<2x128xf32> -> vector<2x128xf32>
    %52 = vector.broadcast %10 : vector<1x128xf32> to vector<2x128xf32>
    %53 = arith.addf %51, %52 : vector<2x128xf32>
    %54 = vector.extract_strided_slice %49 {offsets = [0, 0], sizes = [2, 64], strides = [1, 1]} : vector<2x128xf32> to vector<2x64xf32>
    %55 = arith.negf %54 : vector<2x64xf32>
    %56 = math.exp %55 : vector<2x64xf32>
    %cst_17 = arith.constant 1.000000e+00 : f32
    %57 = vector.broadcast %cst_17 : f32 to vector<2x64xf32>
    %58 = arith.addf %57, %56 : vector<2x64xf32>
    %59 = arith.divf %57, %58 : vector<2x64xf32>
    %60 = vector.extract_strided_slice %59 {offsets = [0, 0], sizes = [2, 32], strides = [1, 1]} : vector<2x64xf32> to vector<2x32xf32>
    %61 = vector.extract_strided_slice %59 {offsets = [0, 32], sizes = [2, 32], strides = [1, 1]} : vector<2x64xf32> to vector<2x32xf32>
    %62 = vector.extract_strided_slice %49 {offsets = [0, 64], sizes = [2, 32], strides = [1, 1]} : vector<2x128xf32> to vector<2x32xf32>
    %63 = vector.extract_strided_slice %49 {offsets = [0, 96], sizes = [2, 32], strides = [1, 1]} : vector<2x128xf32> to vector<2x32xf32>
    %64 = arith.mulf %60, %63 : vector<2x32xf32>
    %65 = arith.addf %62, %64 : vector<2x32xf32>
    %66 = math.tanh %65 : vector<2x32xf32>
    %cst_18 = arith.constant 1.000000e+00 : f32
    %67 = vector.broadcast %cst_18 : f32 to vector<2x32xf32>
    %68 = arith.subf %67, %61 : vector<2x32xf32>
    %69 = arith.mulf %68, %66 : vector<2x32xf32>
    %70 = arith.mulf %61, %47 : vector<2x32xf32>
    %71 = arith.addf %69, %70 : vector<2x32xf32>
    %72 = vector.extract_strided_slice %53 {offsets = [0, 0], sizes = [2, 64], strides = [1, 1]} : vector<2x128xf32> to vector<2x64xf32>
    %73 = arith.negf %72 : vector<2x64xf32>
    %74 = math.exp %73 : vector<2x64xf32>
    %cst_19 = arith.constant 1.000000e+00 : f32
    %75 = vector.broadcast %cst_19 : f32 to vector<2x64xf32>
    %76 = arith.addf %75, %74 : vector<2x64xf32>
    %77 = arith.divf %75, %76 : vector<2x64xf32>
    %78 = vector.extract_strided_slice %77 {offsets = [0, 0], sizes = [2, 32], strides = [1, 1]} : vector<2x64xf32> to vector<2x32xf32>
    %79 = vector.extract_strided_slice %77 {offsets = [0, 32], sizes = [2, 32], strides = [1, 1]} : vector<2x64xf32> to vector<2x32xf32>
    %80 = vector.extract_strided_slice %53 {offsets = [0, 64], sizes = [2, 32], strides = [1, 1]} : vector<2x128xf32> to vector<2x32xf32>
    %81 = vector.extract_strided_slice %53 {offsets = [0, 96], sizes = [2, 32], strides = [1, 1]} : vector<2x128xf32> to vector<2x32xf32>
    %82 = arith.mulf %78, %81 : vector<2x32xf32>
    %83 = arith.addf %80, %82 : vector<2x32xf32>
    %84 = math.tanh %83 : vector<2x32xf32>
    %cst_20 = arith.constant 1.000000e+00 : f32
    %85 = vector.broadcast %cst_20 : f32 to vector<2x32xf32>
    %86 = arith.subf %85, %79 : vector<2x32xf32>
    %87 = arith.mulf %86, %84 : vector<2x32xf32>
    %88 = arith.mulf %79, %27 : vector<2x32xf32>
    %89 = arith.addf %87, %88 : vector<2x32xf32>
    %cst_21 = arith.constant dense<0.000000e+00> : vector<2x128xf32>
    %90 = tpu.matmul %71, %1, %cst_21 {dimension_numbers = #tpu.dot_dimension_numbers<[1], [0], [0], [1], [0, 0, 1, 1], [], []>} : vector<2x32xf32>, vector<32x128xf32>, vector<2x128xf32> -> vector<2x128xf32>
    %91 = arith.addf %18, %90 : vector<2x128xf32>
    %92 = tpu.concatenate %71, %89 in 1 : vector<2x32xf32>, vector<2x32xf32> -> vector<2x64xf32>
    %cst_22 = arith.constant dense<0.000000e+00> : vector<2x128xf32>
    %93 = tpu.matmul %92, %2, %cst_22 {dimension_numbers = #tpu.dot_dimension_numbers<[1], [0], [0], [1], [0, 0, 1, 1], [], []>} : vector<2x64xf32>, vector<64x128xf32>, vector<2x128xf32> -> vector<2x128xf32>
    %94 = vector.broadcast %10 : vector<1x128xf32> to vector<2x128xf32>
    %95 = arith.addf %93, %94 : vector<2x128xf32>
    %96 = vector.extract_strided_slice %91 {offsets = [0, 0], sizes = [2, 64], strides = [1, 1]} : vector<2x128xf32> to vector<2x64xf32>
    %97 = arith.negf %96 : vector<2x64xf32>
    %98 = math.exp %97 : vector<2x64xf32>
    %cst_23 = arith.constant 1.000000e+00 : f32
    %99 = vector.broadcast %cst_23 : f32 to vector<2x64xf32>
    %100 = arith.addf %99, %98 : vector<2x64xf32>
    %101 = arith.divf %99, %100 : vector<2x64xf32>
    %102 = vector.extract_strided_slice %101 {offsets = [0, 0], sizes = [2, 32], strides = [1, 1]} : vector<2x64xf32> to vector<2x32xf32>
    %103 = vector.extract_strided_slice %101 {offsets = [0, 32], sizes = [2, 32], strides = [1, 1]} : vector<2x64xf32> to vector<2x32xf32>
    %104 = vector.extract_strided_slice %91 {offsets = [0, 64], sizes = [2, 32], strides = [1, 1]} : vector<2x128xf32> to vector<2x32xf32>
    %105 = vector.extract_strided_slice %91 {offsets = [0, 96], sizes = [2, 32], strides = [1, 1]} : vector<2x128xf32> to vector<2x32xf32>
    %106 = arith.mulf %102, %105 : vector<2x32xf32>
    %107 = arith.addf %104, %106 : vector<2x32xf32>
    %108 = math.tanh %107 : vector<2x32xf32>
    %cst_24 = arith.constant 1.000000e+00 : f32
    %109 = vector.broadcast %cst_24 : f32 to vector<2x32xf32>
    %110 = arith.subf %109, %103 : vector<2x32xf32>
    %111 = arith.mulf %110, %108 : vector<2x32xf32>
    %112 = arith.mulf %103, %71 : vector<2x32xf32>
    %113 = arith.addf %111, %112 : vector<2x32xf32>
    %114 = vector.extract_strided_slice %95 {offsets = [0, 0], sizes = [2, 64], strides = [1, 1]} : vector<2x128xf32> to vector<2x64xf32>
    %115 = arith.negf %114 : vector<2x64xf32>
    %116 = math.exp %115 : vector<2x64xf32>
    %cst_25 = arith.constant 1.000000e+00 : f32
    %117 = vector.broadcast %cst_25 : f32 to vector<2x64xf32>
    %118 = arith.addf %117, %116 : vector<2x64xf32>
    %119 = arith.divf %117, %118 : vector<2x64xf32>
    %120 = vector.extract_strided_slice %119 {offsets = [0, 0], sizes = [2, 32], strides = [1, 1]} : vector<2x64xf32> to vector<2x32xf32>
    %121 = vector.extract_strided_slice %119 {offsets = [0, 32], sizes = [2, 32], strides = [1, 1]} : vector<2x64xf32> to vector<2x32xf32>
    %122 = vector.extract_strided_slice %95 {offsets = [0, 64], sizes = [2, 32], strides = [1, 1]} : vector<2x128xf32> to vector<2x32xf32>
    %123 = vector.extract_strided_slice %95 {offsets = [0, 96], sizes = [2, 32], strides = [1, 1]} : vector<2x128xf32> to vector<2x32xf32>
    %124 = arith.mulf %120, %123 : vector<2x32xf32>
    %125 = arith.addf %122, %124 : vector<2x32xf32>
    %126 = math.tanh %125 : vector<2x32xf32>
    %cst_26 = arith.constant 1.000000e+00 : f32
    %127 = vector.broadcast %cst_26 : f32 to vector<2x32xf32>
    %128 = arith.subf %127, %121 : vector<2x32xf32>
    %129 = arith.mulf %128, %126 : vector<2x32xf32>
    %130 = arith.mulf %121, %89 : vector<2x32xf32>
    %131 = arith.addf %129, %130 : vector<2x32xf32>
    %cst_27 = arith.constant dense<0.000000e+00> : vector<2x128xf32>
    %132 = tpu.matmul %113, %1, %cst_27 {dimension_numbers = #tpu.dot_dimension_numbers<[1], [0], [0], [1], [0, 0, 1, 1], [], []>} : vector<2x32xf32>, vector<32x128xf32>, vector<2x128xf32> -> vector<2x128xf32>
    %133 = arith.addf %19, %132 : vector<2x128xf32>
    %134 = tpu.concatenate %113, %131 in 1 : vector<2x32xf32>, vector<2x32xf32> -> vector<2x64xf32>
    %cst_28 = arith.constant dense<0.000000e+00> : vector<2x128xf32>
    %135 = tpu.matmul %134, %2, %cst_28 {dimension_numbers = #tpu.dot_dimension_numbers<[1], [0], [0], [1], [0, 0, 1, 1], [], []>} : vector<2x64xf32>, vector<64x128xf32>, vector<2x128xf32> -> vector<2x128xf32>
    %136 = vector.broadcast %10 : vector<1x128xf32> to vector<2x128xf32>
    %137 = arith.addf %135, %136 : vector<2x128xf32>
    %138 = vector.extract_strided_slice %133 {offsets = [0, 0], sizes = [2, 64], strides = [1, 1]} : vector<2x128xf32> to vector<2x64xf32>
    %139 = arith.negf %138 : vector<2x64xf32>
    %140 = math.exp %139 : vector<2x64xf32>
    %cst_29 = arith.constant 1.000000e+00 : f32
    %141 = vector.broadcast %cst_29 : f32 to vector<2x64xf32>
    %142 = arith.addf %141, %140 : vector<2x64xf32>
    %143 = arith.divf %141, %142 : vector<2x64xf32>
    %144 = vector.extract_strided_slice %143 {offsets = [0, 0], sizes = [2, 32], strides = [1, 1]} : vector<2x64xf32> to vector<2x32xf32>
    %145 = vector.extract_strided_slice %143 {offsets = [0, 32], sizes = [2, 32], strides = [1, 1]} : vector<2x64xf32> to vector<2x32xf32>
    %146 = vector.extract_strided_slice %133 {offsets = [0, 64], sizes = [2, 32], strides = [1, 1]} : vector<2x128xf32> to vector<2x32xf32>
    %147 = vector.extract_strided_slice %133 {offsets = [0, 96], sizes = [2, 32], strides = [1, 1]} : vector<2x128xf32> to vector<2x32xf32>
    %148 = arith.mulf %144, %147 : vector<2x32xf32>
    %149 = arith.addf %146, %148 : vector<2x32xf32>
    %150 = math.tanh %149 : vector<2x32xf32>
    %cst_30 = arith.constant 1.000000e+00 : f32
    %151 = vector.broadcast %cst_30 : f32 to vector<2x32xf32>
    %152 = arith.subf %151, %145 : vector<2x32xf32>
    %153 = arith.mulf %152, %150 : vector<2x32xf32>
    %154 = arith.mulf %145, %113 : vector<2x32xf32>
    %155 = arith.addf %153, %154 : vector<2x32xf32>
    %156 = vector.extract_strided_slice %137 {offsets = [0, 0], sizes = [2, 64], strides = [1, 1]} : vector<2x128xf32> to vector<2x64xf32>
    %157 = arith.negf %156 : vector<2x64xf32>
    %158 = math.exp %157 : vector<2x64xf32>
    %cst_31 = arith.constant 1.000000e+00 : f32
    %159 = vector.broadcast %cst_31 : f32 to vector<2x64xf32>
    %160 = arith.addf %159, %158 : vector<2x64xf32>
    %161 = arith.divf %159, %160 : vector<2x64xf32>
    %162 = vector.extract_strided_slice %161 {offsets = [0, 0], sizes = [2, 32], strides = [1, 1]} : vector<2x64xf32> to vector<2x32xf32>
    %163 = vector.extract_strided_slice %161 {offsets = [0, 32], sizes = [2, 32], strides = [1, 1]} : vector<2x64xf32> to vector<2x32xf32>
    %164 = vector.extract_strided_slice %137 {offsets = [0, 64], sizes = [2, 32], strides = [1, 1]} : vector<2x128xf32> to vector<2x32xf32>
    %165 = vector.extract_strided_slice %137 {offsets = [0, 96], sizes = [2, 32], strides = [1, 1]} : vector<2x128xf32> to vector<2x32xf32>
    %166 = arith.mulf %162, %165 : vector<2x32xf32>
    %167 = arith.addf %164, %166 : vector<2x32xf32>
    %168 = math.tanh %167 : vector<2x32xf32>
    %cst_32 = arith.constant 1.000000e+00 : f32
    %169 = vector.broadcast %cst_32 : f32 to vector<2x32xf32>
    %170 = arith.subf %169, %163 : vector<2x32xf32>
    %171 = arith.mulf %170, %168 : vector<2x32xf32>
    %172 = arith.mulf %163, %131 : vector<2x32xf32>
    %173 = arith.addf %171, %172 : vector<2x32xf32>
    %cst_33 = arith.constant dense<0.000000e+00> : vector<2x128xf32>
    %174 = tpu.matmul %155, %1, %cst_33 {dimension_numbers = #tpu.dot_dimension_numbers<[1], [0], [0], [1], [0, 0, 1, 1], [], []>} : vector<2x32xf32>, vector<32x128xf32>, vector<2x128xf32> -> vector<2x128xf32>
    %175 = arith.addf %20, %174 : vector<2x128xf32>
    %176 = tpu.concatenate %155, %173 in 1 : vector<2x32xf32>, vector<2x32xf32> -> vector<2x64xf32>
    %cst_34 = arith.constant dense<0.000000e+00> : vector<2x128xf32>
    %177 = tpu.matmul %176, %2, %cst_34 {dimension_numbers = #tpu.dot_dimension_numbers<[1], [0], [0], [1], [0, 0, 1, 1], [], []>} : vector<2x64xf32>, vector<64x128xf32>, vector<2x128xf32> -> vector<2x128xf32>
    %178 = vector.broadcast %10 : vector<1x128xf32> to vector<2x128xf32>
    %179 = arith.addf %177, %178 : vector<2x128xf32>
    %180 = vector.extract_strided_slice %175 {offsets = [0, 0], sizes = [2, 64], strides = [1, 1]} : vector<2x128xf32> to vector<2x64xf32>
    %181 = arith.negf %180 : vector<2x64xf32>
    %182 = math.exp %181 : vector<2x64xf32>
    %cst_35 = arith.constant 1.000000e+00 : f32
    %183 = vector.broadcast %cst_35 : f32 to vector<2x64xf32>
    %184 = arith.addf %183, %182 : vector<2x64xf32>
    %185 = arith.divf %183, %184 : vector<2x64xf32>
    %186 = vector.extract_strided_slice %185 {offsets = [0, 0], sizes = [2, 32], strides = [1, 1]} : vector<2x64xf32> to vector<2x32xf32>
    %187 = vector.extract_strided_slice %185 {offsets = [0, 32], sizes = [2, 32], strides = [1, 1]} : vector<2x64xf32> to vector<2x32xf32>
    %188 = vector.extract_strided_slice %175 {offsets = [0, 64], sizes = [2, 32], strides = [1, 1]} : vector<2x128xf32> to vector<2x32xf32>
    %189 = vector.extract_strided_slice %175 {offsets = [0, 96], sizes = [2, 32], strides = [1, 1]} : vector<2x128xf32> to vector<2x32xf32>
    %190 = arith.mulf %186, %189 : vector<2x32xf32>
    %191 = arith.addf %188, %190 : vector<2x32xf32>
    %192 = math.tanh %191 : vector<2x32xf32>
    %cst_36 = arith.constant 1.000000e+00 : f32
    %193 = vector.broadcast %cst_36 : f32 to vector<2x32xf32>
    %194 = arith.subf %193, %187 : vector<2x32xf32>
    %195 = arith.mulf %194, %192 : vector<2x32xf32>
    %196 = arith.mulf %187, %155 : vector<2x32xf32>
    %197 = arith.addf %195, %196 : vector<2x32xf32>
    %198 = vector.extract_strided_slice %179 {offsets = [0, 0], sizes = [2, 64], strides = [1, 1]} : vector<2x128xf32> to vector<2x64xf32>
    %199 = arith.negf %198 : vector<2x64xf32>
    %200 = math.exp %199 : vector<2x64xf32>
    %cst_37 = arith.constant 1.000000e+00 : f32
    %201 = vector.broadcast %cst_37 : f32 to vector<2x64xf32>
    %202 = arith.addf %201, %200 : vector<2x64xf32>
    %203 = arith.divf %201, %202 : vector<2x64xf32>
    %204 = vector.extract_strided_slice %203 {offsets = [0, 0], sizes = [2, 32], strides = [1, 1]} : vector<2x64xf32> to vector<2x32xf32>
    %205 = vector.extract_strided_slice %203 {offsets = [0, 32], sizes = [2, 32], strides = [1, 1]} : vector<2x64xf32> to vector<2x32xf32>
    %206 = vector.extract_strided_slice %179 {offsets = [0, 64], sizes = [2, 32], strides = [1, 1]} : vector<2x128xf32> to vector<2x32xf32>
    %207 = vector.extract_strided_slice %179 {offsets = [0, 96], sizes = [2, 32], strides = [1, 1]} : vector<2x128xf32> to vector<2x32xf32>
    %208 = arith.mulf %204, %207 : vector<2x32xf32>
    %209 = arith.addf %206, %208 : vector<2x32xf32>
    %210 = math.tanh %209 : vector<2x32xf32>
    %cst_38 = arith.constant 1.000000e+00 : f32
    %211 = vector.broadcast %cst_38 : f32 to vector<2x32xf32>
    %212 = arith.subf %211, %205 : vector<2x32xf32>
    %213 = arith.mulf %212, %210 : vector<2x32xf32>
    %214 = arith.mulf %205, %173 : vector<2x32xf32>
    %215 = arith.addf %213, %214 : vector<2x32xf32>
    %cst_39 = arith.constant dense<0.000000e+00> : vector<2x128xf32>
    %216 = tpu.matmul %197, %1, %cst_39 {dimension_numbers = #tpu.dot_dimension_numbers<[1], [0], [0], [1], [0, 0, 1, 1], [], []>} : vector<2x32xf32>, vector<32x128xf32>, vector<2x128xf32> -> vector<2x128xf32>
    %217 = arith.addf %21, %216 : vector<2x128xf32>
    %218 = tpu.concatenate %197, %215 in 1 : vector<2x32xf32>, vector<2x32xf32> -> vector<2x64xf32>
    %cst_40 = arith.constant dense<0.000000e+00> : vector<2x128xf32>
    %219 = tpu.matmul %218, %2, %cst_40 {dimension_numbers = #tpu.dot_dimension_numbers<[1], [0], [0], [1], [0, 0, 1, 1], [], []>} : vector<2x64xf32>, vector<64x128xf32>, vector<2x128xf32> -> vector<2x128xf32>
    %220 = vector.broadcast %10 : vector<1x128xf32> to vector<2x128xf32>
    %221 = arith.addf %219, %220 : vector<2x128xf32>
    %222 = vector.extract_strided_slice %217 {offsets = [0, 0], sizes = [2, 64], strides = [1, 1]} : vector<2x128xf32> to vector<2x64xf32>
    %223 = arith.negf %222 : vector<2x64xf32>
    %224 = math.exp %223 : vector<2x64xf32>
    %cst_41 = arith.constant 1.000000e+00 : f32
    %225 = vector.broadcast %cst_41 : f32 to vector<2x64xf32>
    %226 = arith.addf %225, %224 : vector<2x64xf32>
    %227 = arith.divf %225, %226 : vector<2x64xf32>
    %228 = vector.extract_strided_slice %227 {offsets = [0, 0], sizes = [2, 32], strides = [1, 1]} : vector<2x64xf32> to vector<2x32xf32>
    %229 = vector.extract_strided_slice %227 {offsets = [0, 32], sizes = [2, 32], strides = [1, 1]} : vector<2x64xf32> to vector<2x32xf32>
    %230 = vector.extract_strided_slice %217 {offsets = [0, 64], sizes = [2, 32], strides = [1, 1]} : vector<2x128xf32> to vector<2x32xf32>
    %231 = vector.extract_strided_slice %217 {offsets = [0, 96], sizes = [2, 32], strides = [1, 1]} : vector<2x128xf32> to vector<2x32xf32>
    %232 = arith.mulf %228, %231 : vector<2x32xf32>
    %233 = arith.addf %230, %232 : vector<2x32xf32>
    %234 = math.tanh %233 : vector<2x32xf32>
    %cst_42 = arith.constant 1.000000e+00 : f32
    %235 = vector.broadcast %cst_42 : f32 to vector<2x32xf32>
    %236 = arith.subf %235, %229 : vector<2x32xf32>
    %237 = arith.mulf %236, %234 : vector<2x32xf32>
    %238 = arith.mulf %229, %197 : vector<2x32xf32>
    %239 = arith.addf %237, %238 : vector<2x32xf32>
    %240 = vector.extract_strided_slice %221 {offsets = [0, 0], sizes = [2, 64], strides = [1, 1]} : vector<2x128xf32> to vector<2x64xf32>
    %241 = arith.negf %240 : vector<2x64xf32>
    %242 = math.exp %241 : vector<2x64xf32>
    %cst_43 = arith.constant 1.000000e+00 : f32
    %243 = vector.broadcast %cst_43 : f32 to vector<2x64xf32>
    %244 = arith.addf %243, %242 : vector<2x64xf32>
    %245 = arith.divf %243, %244 : vector<2x64xf32>
    %246 = vector.extract_strided_slice %245 {offsets = [0, 0], sizes = [2, 32], strides = [1, 1]} : vector<2x64xf32> to vector<2x32xf32>
    %247 = vector.extract_strided_slice %245 {offsets = [0, 32], sizes = [2, 32], strides = [1, 1]} : vector<2x64xf32> to vector<2x32xf32>
    %248 = vector.extract_strided_slice %221 {offsets = [0, 64], sizes = [2, 32], strides = [1, 1]} : vector<2x128xf32> to vector<2x32xf32>
    %249 = vector.extract_strided_slice %221 {offsets = [0, 96], sizes = [2, 32], strides = [1, 1]} : vector<2x128xf32> to vector<2x32xf32>
    %250 = arith.mulf %246, %249 : vector<2x32xf32>
    %251 = arith.addf %248, %250 : vector<2x32xf32>
    %252 = math.tanh %251 : vector<2x32xf32>
    %cst_44 = arith.constant 1.000000e+00 : f32
    %253 = vector.broadcast %cst_44 : f32 to vector<2x32xf32>
    %254 = arith.subf %253, %247 : vector<2x32xf32>
    %255 = arith.mulf %254, %252 : vector<2x32xf32>
    %256 = arith.mulf %247, %215 : vector<2x32xf32>
    %257 = arith.addf %255, %256 : vector<2x32xf32>
    %cst_45 = arith.constant dense<0.000000e+00> : vector<2x128xf32>
    %258 = tpu.matmul %239, %1, %cst_45 {dimension_numbers = #tpu.dot_dimension_numbers<[1], [0], [0], [1], [0, 0, 1, 1], [], []>} : vector<2x32xf32>, vector<32x128xf32>, vector<2x128xf32> -> vector<2x128xf32>
    %259 = arith.addf %22, %258 : vector<2x128xf32>
    %260 = tpu.concatenate %239, %257 in 1 : vector<2x32xf32>, vector<2x32xf32> -> vector<2x64xf32>
    %cst_46 = arith.constant dense<0.000000e+00> : vector<2x128xf32>
    %261 = tpu.matmul %260, %2, %cst_46 {dimension_numbers = #tpu.dot_dimension_numbers<[1], [0], [0], [1], [0, 0, 1, 1], [], []>} : vector<2x64xf32>, vector<64x128xf32>, vector<2x128xf32> -> vector<2x128xf32>
    %262 = vector.broadcast %10 : vector<1x128xf32> to vector<2x128xf32>
    %263 = arith.addf %261, %262 : vector<2x128xf32>
    %264 = vector.extract_strided_slice %259 {offsets = [0, 0], sizes = [2, 64], strides = [1, 1]} : vector<2x128xf32> to vector<2x64xf32>
    %265 = arith.negf %264 : vector<2x64xf32>
    %266 = math.exp %265 : vector<2x64xf32>
    %cst_47 = arith.constant 1.000000e+00 : f32
    %267 = vector.broadcast %cst_47 : f32 to vector<2x64xf32>
    %268 = arith.addf %267, %266 : vector<2x64xf32>
    %269 = arith.divf %267, %268 : vector<2x64xf32>
    %270 = vector.extract_strided_slice %269 {offsets = [0, 0], sizes = [2, 32], strides = [1, 1]} : vector<2x64xf32> to vector<2x32xf32>
    %271 = vector.extract_strided_slice %269 {offsets = [0, 32], sizes = [2, 32], strides = [1, 1]} : vector<2x64xf32> to vector<2x32xf32>
    %272 = vector.extract_strided_slice %259 {offsets = [0, 64], sizes = [2, 32], strides = [1, 1]} : vector<2x128xf32> to vector<2x32xf32>
    %273 = vector.extract_strided_slice %259 {offsets = [0, 96], sizes = [2, 32], strides = [1, 1]} : vector<2x128xf32> to vector<2x32xf32>
    %274 = arith.mulf %270, %273 : vector<2x32xf32>
    %275 = arith.addf %272, %274 : vector<2x32xf32>
    %276 = math.tanh %275 : vector<2x32xf32>
    %cst_48 = arith.constant 1.000000e+00 : f32
    %277 = vector.broadcast %cst_48 : f32 to vector<2x32xf32>
    %278 = arith.subf %277, %271 : vector<2x32xf32>
    %279 = arith.mulf %278, %276 : vector<2x32xf32>
    %280 = arith.mulf %271, %239 : vector<2x32xf32>
    %281 = arith.addf %279, %280 : vector<2x32xf32>
    %282 = vector.extract_strided_slice %263 {offsets = [0, 0], sizes = [2, 64], strides = [1, 1]} : vector<2x128xf32> to vector<2x64xf32>
    %283 = arith.negf %282 : vector<2x64xf32>
    %284 = math.exp %283 : vector<2x64xf32>
    %cst_49 = arith.constant 1.000000e+00 : f32
    %285 = vector.broadcast %cst_49 : f32 to vector<2x64xf32>
    %286 = arith.addf %285, %284 : vector<2x64xf32>
    %287 = arith.divf %285, %286 : vector<2x64xf32>
    %288 = vector.extract_strided_slice %287 {offsets = [0, 0], sizes = [2, 32], strides = [1, 1]} : vector<2x64xf32> to vector<2x32xf32>
    %289 = vector.extract_strided_slice %287 {offsets = [0, 32], sizes = [2, 32], strides = [1, 1]} : vector<2x64xf32> to vector<2x32xf32>
    %290 = vector.extract_strided_slice %263 {offsets = [0, 64], sizes = [2, 32], strides = [1, 1]} : vector<2x128xf32> to vector<2x32xf32>
    %291 = vector.extract_strided_slice %263 {offsets = [0, 96], sizes = [2, 32], strides = [1, 1]} : vector<2x128xf32> to vector<2x32xf32>
    %292 = arith.mulf %288, %291 : vector<2x32xf32>
    %293 = arith.addf %290, %292 : vector<2x32xf32>
    %294 = math.tanh %293 : vector<2x32xf32>
    %cst_50 = arith.constant 1.000000e+00 : f32
    %295 = vector.broadcast %cst_50 : f32 to vector<2x32xf32>
    %296 = arith.subf %295, %289 : vector<2x32xf32>
    %297 = arith.mulf %296, %294 : vector<2x32xf32>
    %298 = arith.mulf %289, %257 : vector<2x32xf32>
    %299 = arith.addf %297, %298 : vector<2x32xf32>
    %cst_51 = arith.constant dense<0.000000e+00> : vector<2x128xf32>
    %300 = tpu.matmul %281, %1, %cst_51 {dimension_numbers = #tpu.dot_dimension_numbers<[1], [0], [0], [1], [0, 0, 1, 1], [], []>} : vector<2x32xf32>, vector<32x128xf32>, vector<2x128xf32> -> vector<2x128xf32>
    %301 = arith.addf %23, %300 : vector<2x128xf32>
    %302 = tpu.concatenate %281, %299 in 1 : vector<2x32xf32>, vector<2x32xf32> -> vector<2x64xf32>
    %cst_52 = arith.constant dense<0.000000e+00> : vector<2x128xf32>
    %303 = tpu.matmul %302, %2, %cst_52 {dimension_numbers = #tpu.dot_dimension_numbers<[1], [0], [0], [1], [0, 0, 1, 1], [], []>} : vector<2x64xf32>, vector<64x128xf32>, vector<2x128xf32> -> vector<2x128xf32>
    %304 = vector.broadcast %10 : vector<1x128xf32> to vector<2x128xf32>
    %305 = arith.addf %303, %304 : vector<2x128xf32>
    %306 = vector.extract_strided_slice %301 {offsets = [0, 0], sizes = [2, 64], strides = [1, 1]} : vector<2x128xf32> to vector<2x64xf32>
    %307 = arith.negf %306 : vector<2x64xf32>
    %308 = math.exp %307 : vector<2x64xf32>
    %cst_53 = arith.constant 1.000000e+00 : f32
    %309 = vector.broadcast %cst_53 : f32 to vector<2x64xf32>
    %310 = arith.addf %309, %308 : vector<2x64xf32>
    %311 = arith.divf %309, %310 : vector<2x64xf32>
    %312 = vector.extract_strided_slice %311 {offsets = [0, 0], sizes = [2, 32], strides = [1, 1]} : vector<2x64xf32> to vector<2x32xf32>
    %313 = vector.extract_strided_slice %311 {offsets = [0, 32], sizes = [2, 32], strides = [1, 1]} : vector<2x64xf32> to vector<2x32xf32>
    %314 = vector.extract_strided_slice %301 {offsets = [0, 64], sizes = [2, 32], strides = [1, 1]} : vector<2x128xf32> to vector<2x32xf32>
    %315 = vector.extract_strided_slice %301 {offsets = [0, 96], sizes = [2, 32], strides = [1, 1]} : vector<2x128xf32> to vector<2x32xf32>
    %316 = arith.mulf %312, %315 : vector<2x32xf32>
    %317 = arith.addf %314, %316 : vector<2x32xf32>
    %318 = math.tanh %317 : vector<2x32xf32>
    %cst_54 = arith.constant 1.000000e+00 : f32
    %319 = vector.broadcast %cst_54 : f32 to vector<2x32xf32>
    %320 = arith.subf %319, %313 : vector<2x32xf32>
    %321 = arith.mulf %320, %318 : vector<2x32xf32>
    %322 = arith.mulf %313, %281 : vector<2x32xf32>
    %323 = arith.addf %321, %322 : vector<2x32xf32>
    %324 = vector.extract_strided_slice %305 {offsets = [0, 0], sizes = [2, 64], strides = [1, 1]} : vector<2x128xf32> to vector<2x64xf32>
    %325 = arith.negf %324 : vector<2x64xf32>
    %326 = math.exp %325 : vector<2x64xf32>
    %cst_55 = arith.constant 1.000000e+00 : f32
    %327 = vector.broadcast %cst_55 : f32 to vector<2x64xf32>
    %328 = arith.addf %327, %326 : vector<2x64xf32>
    %329 = arith.divf %327, %328 : vector<2x64xf32>
    %330 = vector.extract_strided_slice %329 {offsets = [0, 0], sizes = [2, 32], strides = [1, 1]} : vector<2x64xf32> to vector<2x32xf32>
    %331 = vector.extract_strided_slice %329 {offsets = [0, 32], sizes = [2, 32], strides = [1, 1]} : vector<2x64xf32> to vector<2x32xf32>
    %332 = vector.extract_strided_slice %305 {offsets = [0, 64], sizes = [2, 32], strides = [1, 1]} : vector<2x128xf32> to vector<2x32xf32>
    %333 = vector.extract_strided_slice %305 {offsets = [0, 96], sizes = [2, 32], strides = [1, 1]} : vector<2x128xf32> to vector<2x32xf32>
    %334 = arith.mulf %330, %333 : vector<2x32xf32>
    %335 = arith.addf %332, %334 : vector<2x32xf32>
    %336 = math.tanh %335 : vector<2x32xf32>
    %cst_56 = arith.constant 1.000000e+00 : f32
    %337 = vector.broadcast %cst_56 : f32 to vector<2x32xf32>
    %338 = arith.subf %337, %331 : vector<2x32xf32>
    %339 = arith.mulf %338, %336 : vector<2x32xf32>
    %340 = arith.mulf %331, %299 : vector<2x32xf32>
    %341 = arith.addf %339, %340 : vector<2x32xf32>
    %342 = tpu.concatenate %323, %341 in 1 : vector<2x32xf32>, vector<2x32xf32> -> vector<2x64xf32>
    %cst_57 = arith.constant dense<0.000000e+00> : vector<2x128xf32>
    %343 = tpu.matmul %342, %2, %cst_57 {dimension_numbers = #tpu.dot_dimension_numbers<[1], [0], [0], [1], [0, 0, 1, 1], [], []>} : vector<2x64xf32>, vector<64x128xf32>, vector<2x128xf32> -> vector<2x128xf32>
    %344 = vector.broadcast %10 : vector<1x128xf32> to vector<2x128xf32>
    %345 = arith.addf %343, %344 : vector<2x128xf32>
    %346 = vector.extract_strided_slice %345 {offsets = [0, 0], sizes = [2, 64], strides = [1, 1]} : vector<2x128xf32> to vector<2x64xf32>
    %347 = arith.negf %346 : vector<2x64xf32>
    %348 = math.exp %347 : vector<2x64xf32>
    %cst_58 = arith.constant 1.000000e+00 : f32
    %349 = vector.broadcast %cst_58 : f32 to vector<2x64xf32>
    %350 = arith.addf %349, %348 : vector<2x64xf32>
    %351 = arith.divf %349, %350 : vector<2x64xf32>
    %352 = vector.extract_strided_slice %351 {offsets = [0, 0], sizes = [2, 32], strides = [1, 1]} : vector<2x64xf32> to vector<2x32xf32>
    %353 = vector.extract_strided_slice %351 {offsets = [0, 32], sizes = [2, 32], strides = [1, 1]} : vector<2x64xf32> to vector<2x32xf32>
    %354 = vector.extract_strided_slice %345 {offsets = [0, 64], sizes = [2, 32], strides = [1, 1]} : vector<2x128xf32> to vector<2x32xf32>
    %355 = vector.extract_strided_slice %345 {offsets = [0, 96], sizes = [2, 32], strides = [1, 1]} : vector<2x128xf32> to vector<2x32xf32>
    %356 = arith.mulf %352, %355 : vector<2x32xf32>
    %357 = arith.addf %354, %356 : vector<2x32xf32>
    %358 = math.tanh %357 : vector<2x32xf32>
    %cst_59 = arith.constant 1.000000e+00 : f32
    %359 = vector.broadcast %cst_59 : f32 to vector<2x32xf32>
    %360 = arith.subf %359, %353 : vector<2x32xf32>
    %361 = arith.mulf %360, %358 : vector<2x32xf32>
    %362 = arith.mulf %353, %341 : vector<2x32xf32>
    %363 = arith.addf %361, %362 : vector<2x32xf32>
    %cst_60 = arith.constant dense<0.000000e+00> : vector<2x4xf32>
    %364 = tpu.matmul %363, %3, %cst_60 {dimension_numbers = #tpu.dot_dimension_numbers<[1], [0], [0], [1], [0, 0, 1, 1], [], []>} : vector<2x32xf32>, vector<32x4xf32>, vector<2x4xf32> -> vector<2x4xf32>
    %365 = vector.broadcast %11 : vector<1x4xf32> to vector<2x4xf32>
    %366 = arith.addf %364, %365 : vector<2x4xf32>
    %c0_61 = arith.constant 0 : index
    %c0_62 = arith.constant 0 : index
    %367 = vector.load %arg3[%c0_61, %c0_62] : memref<2x4xf32, #tpu.memory_space<vmem>>, vector<2x4xf32>
    tpu.vector_store %arg3[%c0_61, %c0_62], %366 {strides = array<i32>} : memref<2x4xf32, #tpu.memory_space<vmem>>, vector<2x4xf32>,
    return
  }
}

</mosaic_0001>

<bundles_post_ra>
// kernel: forward.1
= control target key start
LH: loop header
LB: loop body
LE: loop exit
PB: predicated region body
PF: predicated region fallthrough
CT: control target
= control target key end

     0   :  { %8 = vsyncpa [#allocation3], 0  ;;  %s2982_s0 = inlined_call_operand.vmem [shape: f32[16,4], index: 0, kind: input, shape index: {}]   ;;  %s2983_s1 = inlined_call_operand.vmem [shape: f32[2,2,32], index: 1, kind: input, shape index: {}]   ;;  %s2984_s2 = inlined_call_operand.hbm [shape: f32[144,128], index: 2, kind: input, shape index: {}]   ;;  %s2985_s3 = inlined_call_operand.hbm [shape: f32[2,4], index: 3, kind: output, shape index: {}]  }
   0x1   :  { %9 = vsyncpa [#allocation4], 0  ;;  %s2500_s12 = smov [#allocation2]  }
   0x2   :  { %s19_s13 = sshll.u32 %s2500_s12, 4  ;;  %s20_s13 = int_to_ptr.vmem [resolvable:$true] %s19_s13 }
   0x3   :  { %s2464_s14 = scalar_lea.vmem %s20_s13, 2304  ;;  %p2469_p1 = scmp.lt.s32.totalorder %s20_s13, %s20_s13 }
   0x4   :  { %p2465_p0 = scmp.ne.s32.totalorder %s20_s13, %s2464_s14  ;;  %p2470_p2 = scmp.lt.s32.totalorder %s2464_s14, %s2464_s14 }
   0x6   :  { %p2471_p3 = por %p2470_p2, %p2469_p1 }
   0x8   :  { %p2472_p4 = pnand %p2471_p3, %p2465_p0 }
   0xa   :  { %2475 = shalt.err (!%p2472_p4)
}
   0xb   :  { %s2501_s15 = smov 128   ;;  %s2502_s16 = smov 8  }
   0xc   :  { %25 = dma.hbm_to_vmem [thread:$0]  %s2984_s2, 2304, %s20_s13, [#allocation3], %s2501_s15, %s2501_s15, %s2502_s16  }
   0xd   :  { %2496 = dma.done.wait [#allocation3], 2304  }
   0xe   :  { %2497 = vsyncadd [#allocation3], 4294964992  ;;  %v2503_v0 = vmov 0.0   ;;  %vm2504_vm0 = vmmov 0   ;;  %vm64_vm1 = vcmask 1043456   ;;  %vm57_vm2 = vcmask 31744  }
   0xf   :  { %2096 = vmatprep.subr.mxu1 %v2503_v0  ;;  %2104 = vmatprep.mubr.msk.f32.mxu1 %vm2504_vm0, %v2503_v0  ;;  %v29_v1 = vld [vmem:[#allocation2] sm:$0xf]  ;;  %v52_v4 = vld [vmem:[%s2982_s0 + $0x8] sm:$0xff]  ;;  %v2544_v5 = vld [vmem:[#allocation2 + $0x18] sm:$0xff]  ;;  %vm146_vm3 = vcmask 261120   ;;  %v53_v9 = vlaneseq  ;;  %s2505_s23 = smov 32  }
  0x10   :  { %v2535_v2 = vld [vmem:[#allocation2 + $0x20] sm:$0xff]  ;;  %2091 = vmatprep.subr.msk.mxu0 %vm64_vm1, %v29_v1  ;;  %v2547_v6 = vld [vmem:[#allocation2 + $0x10] sm:$0xff]  ;;  %v2552_v7 = vld [vmem:[#allocation2 + $0x8] sm:$0xff]  ;;  %s2506_s24 = smov 64   ;;  %s2507_s25 = smov 96   ;;  %vm338_vm4 = vcmask 523264  }
  0x11   :  { %v51_v3 = vld [vmem:[%s2982_s0] sm:$0xff]  ;;  %2097 = vmatpush3.msra.mxu1 %v2535_v2  ;;  %2092 = vmatpush3.msk.msra.mxu0 %vm64_vm1, %v29_v1  ;;  %v46_v10 = vld [vmem:[#allocation2 + $0x88] sm:$0x1f]  ;;  %v2574_v12 = vshrl.u32 %v53_v9, 7  ;;  %v2606_v40 = vld [vmem:[#allocation2 + $0x58] sm:$0xff]  ;;  %vm1917_vm5 = vcmask 25600  }
  0x12   :  { %2093 = vmatprep.mubr.msk.f32.mxu0 %vm57_vm2, %v51_v3  ;;  %2098 = vmatprep.subr.mxu1 %v2503_v0  ;;  %v143_v8 = vld [vmem:[%s2983_s1] sm:$0x3]  ;;  %v48_v11 = vrot.slane %v46_v10, 1  ;;  %v2610_v42 = vld [vmem:[#allocation2 + $0x50] sm:$0xff]  ;;  %v2614_v45 = vld [vmem:[#allocation2 + $0x48] sm:$0xff] }
  0x13   :  { %2094 = vmatmul.mubr.msk.f32.vlgmr.msra.gmra.mxu0 %vm57_vm2, %v52_v4  ;;  %2099 = vmatpush3.msra.mxu1 %v2544_v5  ;;  %v55_v14 = vsub.s32 0, %v2574_v12  ;;  %v2604_v39 = vld [vmem:[#allocation2 + $0x60] sm:$0xff]  ;;  %v2626_v51 = vld [vmem:[#allocation2 + $0x38] sm:$0xff]  ;;  %v2630_v52 = vld [vmem:[#allocation2 + $0x30] sm:$0xff] }
  0x14   :  { %2107 = vmatprep.subr.mxu0 %v2503_v0  ;;  %2100 = vmatprep.subr.mxu1 %v2503_v0  ;;  %v2576_v13 = vadd.f32 %v48_v11, %v46_v10  ;;  %v2619_v47 = vld [vmem:[#allocation2 + $0x40] sm:$0xff]  ;;  %v2634_v53 = vld [vmem:[#allocation2 + $0x28] sm:$0xff]  ;;  %v336_v11 = vsub.s32 2, %v2574_v12 }
  0x15   :  { %2108 = vmatpush3.msra.mxu0 %v2535_v2  ;;  %2101 = vmatpush3.msra.mxu1 %v2547_v6  ;;  %v1937_v57 = vld [vmem:[%s2983_s1 + $0x2] sm:$0x3]  ;;  %s2508_s1 = smov [#allocation5]  }
  0x16   :  { %2109 = vmatprep.subr.mxu0 %v2503_v0  ;;  %2102 = vmatprep.subr.mxu1 %v2503_v0  ;;  %v56_v15 = vrot.slane %v2576_v13, %v55_v14  ;;  %v2666_v14 = vrot.slane %v2576_v13, %v336_v11  ;;  %s1925_s28 = sshll.u32 %s2508_s1, 4  ;;  %s1926_s28 = int_to_ptr.vmem [resolvable:$true] %s1925_s28 }
  0x17   :  { %2110 = vmatpush3.msra.mxu0 %v2544_v5  ;;  %2103 = vmatpush3.msra.mxu1 %v2552_v7  ;;  %s2476_s29 = scalar_lea.vmem %s1926_s28, 32  ;;  %p2481_p6 = scmp.lt.s32.totalorder %s1926_s28, %s1926_s28 }
  0x18   :  { %2111 = vmatprep.subr.mxu0 %v2503_v0  ;;  %2105 = vmatmul.mubr.msk.f32.vlgmr.msra.gmra.mxu1 %vm146_vm3, %v143_v8  ;;  %p2477_p5 = scmp.ne.s32.totalorder %s1926_s28, %s2476_s29  ;;  %p2482_p7 = scmp.lt.s32.totalorder %s2476_s29, %s2476_s29 }
  0x19   :  { %2112 = vmatpush3.msra.mxu0 %v2547_v6  ;;  %2115 = vmatprep.mubr.msk.f32.mxu0 %vm2504_vm0, %v2503_v0 }
  0x1a   :  { %2113 = vmatprep.subr.mxu0 %v2503_v0  ;;  %2118 = vmatprep.subr.mxu1 %v2503_v0  ;;  %p2483_p8 = por %p2482_p7, %p2481_p6 }
  0x1b   :  { %2114 = vmatpush3.msra.mxu0 %v2552_v7  ;;  %2134 = vmatprep.mubr.msk.f32.mxu1 %vm2504_vm0, %v2503_v0 }
  0x1c   :  { %2137 = vmatprep.subr.mxu0 %v2503_v0  ;;  %2119 = vmatpush3.msra.mxu1 %v2604_v39  ;;  %p2484_p9 = pnand %p2483_p8, %p2477_p5 }
  0x1d   :  { %2120 = vmatprep.subr.mxu1 %v2503_v0 }
  0x1e   :  { %2121 = vmatpush3.msra.mxu1 %v2606_v40 }
  0x1f   :  { %2122 = vmatprep.subr.mxu1 %v2503_v0 }
  0x20   :  { %2123 = vmatpush3.msra.mxu1 %v2610_v42 }
  0x21   :  { %2124 = vmatprep.subr.mxu1 %v2503_v0 }
  0x22   :  { %2125 = vmatpush3.msra.mxu1 %v2614_v45 }
  0x23   :  { %2126 = vmatprep.subr.mxu1 %v2503_v0 }
  0x24   :  { %2127 = vmatpush3.msra.mxu1 %v2619_v47 }
  0x25   :  { %2128 = vmatprep.subr.mxu1 %v2503_v0 }
  0x26   :  { %2129 = vmatpush3.msra.mxu1 %v2626_v51 }
  0x27   :  { %2130 = vmatprep.subr.mxu1 %v2503_v0 }
  0x28   :  { %2131 = vmatpush3.msra.mxu1 %v2630_v52 }
  0x29   :  { %2132 = vmatprep.subr.mxu1 %v2503_v0 }
  0x2a   :  { %2133 = vmatpush3.msra.mxu1 %v2634_v53 }
  0x2b   :  { %2167 = vmatprep.subr.mxu1 %v2503_v0 }
  0xd3   :  { %v2095_v16 = vpop.f32.mrf.mxu0 }
  0xd4   :  { %v2580_v17 = vadd.f32 %v2095_v16, %v56_v15 }
  0xd5   :  { %v134_v18 = vpop.f32.mrf.mxu0 }
  0xd6   :  { %v2582_v19 = vadd.f32 %v134_v18, %v56_v15 }
  0xd8   :  { %v216_v20 = vpop.f32.mrf.mxu1 }
  0xd9   :  { %v220_v21 = vadd.f32 %v216_v20, %v2582_v19 }
  0xda   :  { %v2106_v22 = vpop.f32.mrf.mxu1 }
  0xdb   :  { %228 = vrot.lane.b32.xlu0 %v220_v21, %s2505_s23  ;;  %v1939_v23 = vmul.f32 -1.442695, %v220_v21 }
  0xdd   :  { %2356 = vpow2.f32 %v1939_v23 }
  0xea   :  { %v2357_v24 = vpop.eup %2356 }
  0xeb   :  { %v224_v25 = vadd.f32 1.0, %v2357_v24 }
  0xed   :  { %2358 = vrcp.f32 %v224_v25 }
  0xfa   :  { %v2359_v26 = vpop.eup %2358 }
  0xfb   :  { %v238_v33 = vsub.f32 1.0, %v2359_v26 }
 0x14d   :  { %v229_v27 = vpop.permute.xlu0 %228 }
 0x14e   :  { %v231_v28 = vmul.f32 %v2359_v26, %v229_v27 }
 0x150   :  { %233 = vrot.lane.b32.xlu0 %v231_v28, %s2506_s24 }
 0x1c2   :  { %v234_v29 = vpop.permute.xlu0 %233 }
 0x1c3   :  { %v236_v30 = vadd.f32 %v234_v29, %v220_v21 }
 0x1c5   :  { %2360 = vtanh.f32 %v236_v30 }
 0x1d2   :  { %v2361_v31 = vpop.eup %2360 }
 0x1d3   :  { %240 = vrot.lane.b32.xlu1 %v2361_v31, %s2507_s25 }
 0x1d7   :  { %244 = vrot.lane.b32.xlu1 %v143_v8, %s2505_s23 }
 0x245   :  { %v241_v32 = vpop.permute.xlu1 %240 }
 0x246   :  { %v243_v35 = vmul.f32 %v241_v32, %v238_v33 }
 0x249   :  { %v245_v34 = vpop.permute.xlu1 %244 }
 0x24a   :  { %v247_v36 = vmul.f32 %v2359_v26, %v245_v34 }
 0x24c   :  { %v2589_v37 = vadd.f32 %v247_v36, %v243_v35 }
 0x24e   :  { %250 = vrot.lane.b32.xlu0 %v2589_v37, %s2507_s25  ;;  %v435_v63 = vrot.slane %v2589_v37, 6 }
 0x2c0   :  { %v251_v38 = vpop.permute.xlu0 %250 }
 0x2c1   :  { %2116 = vmatmul.mubr.msk.f32.vlgmr.msra.gmra.mxu0 %vm146_vm3, %v251_v38 }
 0x2c2   :  { %2138 = vmatpush3.msra.mxu0 %v2535_v2  ;;  %2145 = vmatprep.mubr.msk.f32.mxu0 %vm2504_vm0, %v2503_v0 }
 0x2c3   :  { %2139 = vmatprep.subr.mxu0 %v2503_v0 }
 0x2c4   :  { %2140 = vmatpush3.msra.mxu0 %v2544_v5 }
 0x2c5   :  { %2141 = vmatprep.subr.mxu0 %v2503_v0 }
 0x2c6   :  { %2142 = vmatpush3.msra.mxu0 %v2547_v6 }
 0x2c7   :  { %2143 = vmatprep.subr.mxu0 %v2503_v0 }
 0x2c8   :  { %2144 = vmatpush3.msra.mxu0 %v2552_v7 }
 0x2c9   :  { %2148 = vmatprep.subr.mxu0 %v2503_v0 }
 0x381   :  { %v320_v41 = vpop.f32.mrf.mxu0 }
 0x382   :  { %v325_v43 = vrot.slane %v320_v41, 6 }
 0x383   :  { %v2117_v44 = vpop.f32.mrf.mxu0 }
 0x384   :  { %v327_v46 = vadd.f32 %v325_v43, %v2582_v19 }
 0x386   :  { %419 = vrot.lane.b32.xlu1 %v327_v46, %s2505_s23  ;;  %v1942_v48 = vmul.f32 -1.442695, %v327_v46 }
 0x388   :  { %2362 = vpow2.f32 %v1942_v48 }
 0x395   :  { %v2363_v49 = vpop.eup %2362 }
 0x396   :  { %v415_v50 = vadd.f32 1.0, %v2363_v49 }
 0x398   :  { %2364 = vrcp.f32 %v415_v50 }
 0x3a5   :  { %v2365_v54 = vpop.eup %2364 }
 0x3a6   :  { %v429_v1 = vsub.f32 1.0, %v2365_v54  ;;  %v437_v8 = vmul.f32 %v2365_v54, %v435_v63 }
 0x3f8   :  { %v420_v55 = vpop.permute.xlu1 %419 }
 0x3f9   :  { %v422_v56 = vmul.f32 %v2365_v54, %v420_v55 }
 0x3fb   :  { %424 = vrot.lane.b32.xlu0 %v422_v56, %s2506_s24 }
 0x3ff   :  { %330 = vrot.lane.b32.xlu0 %v1937_v57, %s2505_s23 }
 0x46d   :  { %v425_v58 = vpop.permute.xlu0 %424 }
 0x46e   :  { %v427_v59 = vadd.f32 %v425_v58, %v327_v46 }
 0x470   :  { %2366 = vtanh.f32 %v427_v59 }
 0x471   :  { %v2643_v60 = vpop.permute.xlu0 %330 }
 0x472   :  { %v333_v61 = vsel %vm146_vm3, %v251_v38, %v2643_v60 }
 0x473   :  { %2135 = vmatmul.mubr.msk.f32.vlgmr.msra.gmra.mxu1 %vm338_vm4, %v333_v61 }
 0x474   :  { %2168 = vmatpush3.msra.mxu1 %v2535_v2  ;;  %2175 = vmatprep.mubr.msk.f32.mxu1 %vm2504_vm0, %v2503_v0 }
 0x475   :  { %2169 = vmatprep.subr.mxu1 %v2503_v0 }
 0x476   :  { %2170 = vmatpush3.msra.mxu1 %v2544_v5 }
 0x477   :  { %2171 = vmatprep.subr.mxu1 %v2503_v0 }
 0x478   :  { %2172 = vmatpush3.msra.mxu1 %v2547_v6 }
 0x479   :  { %2173 = vmatprep.subr.mxu1 %v2503_v0 }
 0x47a   :  { %2174 = vmatpush3.msra.mxu1 %v2552_v7 }
 0x47b   :  { %2178 = vmatprep.subr.mxu1 %v2503_v0 }
 0x47d   :  { %v2367_v62 = vpop.eup %2366 }
 0x47e   :  { %431 = vrot.lane.b32.xlu1 %v2367_v62, %s2507_s25 }
 0x4f0   :  { %v432_v3 = vpop.permute.xlu1 %431 }
 0x4f1   :  { %v434_v4 = vmul.f32 %v432_v3, %v429_v1 }
 0x4f3   :  { %v2660_v9 = vadd.f32 %v437_v8, %v434_v4 }
 0x4f5   :  { %v465_v10 = vrot.slane %v2660_v9, 2 }
 0x4f7   :  { %466 = vrot.lane.b32.xlu1 %v465_v10, %s2507_s25 }
 0x533   :  { %v408_v15 = vpop.f32.mrf.mxu1 }
 0x534   :  { %v409_v16 = vadd.f32 %v408_v15, %v2666_v14 }
 0x535   :  { %v2136_v18 = vpop.f32.mrf.mxu1 }
 0x536   :  { %446 = vrot.lane.b32.xlu0 %v409_v16, %s2505_s23  ;;  %v1943_v13 = vmul.f32 -1.442695, %v409_v16 }
 0x538   :  { %2368 = vpow2.f32 %v1943_v13 }
 0x545   :  { %v2369_v21 = vpop.eup %2368 }
 0x546   :  { %v442_v22 = vadd.f32 1.0, %v2369_v21 }
 0x548   :  { %2370 = vrcp.f32 %v442_v22 }
 0x555   :  { %v2371_v23 = vpop.eup %2370 }
 0x556   :  { %v456_v43 = vsub.f32 1.0, %v2371_v23  ;;  %v462_v46 = vmul.f32 %v2371_v23, %v2643_v60  ;;  %v648_v60 = vrot.slane %v2660_v9, 6 }
 0x569   :  { %v467_v20 = vpop.permute.xlu1 %466 }
 0x56a   :  { %2146 = vmatmul.mubr.msk.f32.vlgmr.msra.gmra.mxu0 %vm146_vm3, %v467_v20 }
 0x56b   :  { %2149 = vmatpush3.msra.mxu0 %v2604_v39  ;;  %2164 = vmatprep.mubr.msk.f32.mxu0 %vm2504_vm0, %v2503_v0 }
 0x56c   :  { %2150 = vmatprep.subr.mxu0 %v2503_v0 }
 0x56d   :  { %2151 = vmatpush3.msra.mxu0 %v2606_v40 }
 0x56e   :  { %2152 = vmatprep.subr.mxu0 %v2503_v0 }
 0x56f   :  { %2153 = vmatpush3.msra.mxu0 %v2610_v42 }
 0x570   :  { %2154 = vmatprep.subr.mxu0 %v2503_v0 }
 0x571   :  { %2155 = vmatpush3.msra.mxu0 %v2614_v45 }
 0x572   :  { %2156 = vmatprep.subr.mxu0 %v2503_v0 }
 0x573   :  { %2157 = vmatpush3.msra.mxu0 %v2619_v47 }
 0x574   :  { %2158 = vmatprep.subr.mxu0 %v2503_v0 }
 0x575   :  { %2159 = vmatpush3.msra.mxu0 %v2626_v51 }
 0x576   :  { %2160 = vmatprep.subr.mxu0 %v2503_v0 }
 0x577   :  { %2161 = vmatpush3.msra.mxu0 %v2630_v52 }
 0x578   :  { %2162 = vmatprep.subr.mxu0 %v2503_v0 }
 0x579   :  { %2163 = vmatpush3.msra.mxu0 %v2634_v53 }
 0x57a   :  { %2197 = vmatprep.subr.mxu0 %v2503_v0 }
 0x5a8   :  { %v447_v24 = vpop.permute.xlu0 %446 }
 0x5a9   :  { %v449_v25 = vmul.f32 %v2371_v23, %v447_v24 }
 0x5ab   :  { %451 = vrot.lane.b32.xlu0 %v449_v25, %s2506_s24 }
 0x61d   :  { %v452_v26 = vpop.permute.xlu0 %451 }
 0x61e   :  { %v454_v27 = vadd.f32 %v452_v26, %v409_v16 }
 0x620   :  { %2372 = vtanh.f32 %v454_v27 }
 0x62a   :  { %v536_v28 = vpop.f32.mrf.mxu0 }
 0x62b   :  { %v541_v29 = vrot.slane %v536_v28, 4 }
 0x62c   :  { %v2147_v30 = vpop.f32.mrf.mxu0 }
 0x62d   :  { %v2373_v31 = vpop.eup %2372  ;;  %v543_v32 = vadd.f32 %v541_v29, %v2582_v19 }
 0x62e   :  { %458 = vrot.lane.b32.xlu0 %v2373_v31, %s2507_s25 }
 0x62f   :  { %632 = vrot.lane.b32.xlu1 %v543_v32, %s2505_s23  ;;  %v1946_v33 = vmul.f32 -1.442695, %v543_v32 }
 0x631   :  { %2374 = vpow2.f32 %v1946_v33 }
 0x63e   :  { %v2375_v34 = vpop.eup %2374 }
 0x63f   :  { %v628_v35 = vadd.f32 1.0, %v2375_v34 }
 0x641   :  { %2376 = vrcp.f32 %v628_v35 }
 0x64e   :  { %v2377_v36 = vpop.eup %2376 }
 0x64f   :  { %v642_v59 = vsub.f32 1.0, %v2377_v36  ;;  %v650_v62 = vmul.f32 %v2377_v36, %v648_v60 }
 0x6a0   :  { %v459_v41 = vpop.permute.xlu0 %458 }
 0x6a1   :  { %v633_v37 = vpop.permute.xlu1 %632  ;;  %v461_v44 = vmul.f32 %v459_v41, %v456_v43 }
 0x6a2   :  { %v635_v38 = vmul.f32 %v2377_v36, %v633_v37 }
 0x6a3   :  { %v2697_v48 = vadd.f32 %v462_v46, %v461_v44 }
 0x6a4   :  { %637 = vrot.lane.b32.xlu1 %v635_v38, %s2506_s24 }
 0x6a5   :  { %v548_v54 = vrot.slane %v2697_v48, 6 }
 0x6a8   :  { %544 = vrot.lane.b32.xlu1 %v2660_v9, %s2507_s25 }
 0x716   :  { %v638_v49 = vpop.permute.xlu1 %637 }
 0x717   :  { %v640_v50 = vadd.f32 %v638_v49, %v543_v32 }
 0x719   :  { %2378 = vtanh.f32 %v640_v50 }
 0x71a   :  { %v545_v55 = vpop.permute.xlu1 %544 }
 0x71b   :  { %v550_v56 = vsel %vm146_vm3, %v545_v55, %v548_v54 }
 0x71c   :  { %v552_v57 = vrot.slane %v550_v56, 2 }
 0x71e   :  { %2165 = vmatmul.mubr.msk.f32.vlgmr.msra.gmra.mxu0 %vm338_vm4, %v552_v57 }
 0x71f   :  { %2198 = vmatpush3.msra.mxu0 %v2535_v2  ;;  %2205 = vmatprep.mubr.msk.f32.mxu0 %vm2504_vm0, %v2503_v0 }
 0x720   :  { %2199 = vmatprep.subr.mxu0 %v2503_v0 }
 0x721   :  { %2200 = vmatpush3.msra.mxu0 %v2544_v5 }
 0x722   :  { %2201 = vmatprep.subr.mxu0 %v2503_v0 }
 0x723   :  { %2202 = vmatpush3.msra.mxu0 %v2547_v6 }
 0x724   :  { %2203 = vmatprep.subr.mxu0 %v2503_v0 }
 0x725   :  { %2204 = vmatpush3.msra.mxu0 %v2552_v7 }
 0x726   :  { %v2379_v58 = vpop.eup %2378  ;;  %2208 = vmatprep.subr.mxu0 %v2503_v0 }
 0x727   :  { %644 = vrot.lane.b32.xlu0 %v2379_v58, %s2507_s25 }
 0x799   :  { %v645_v61 = vpop.permute.xlu0 %644 }
 0x79a   :  { %v647_v63 = vmul.f32 %v645_v61, %v642_v59 }
 0x79c   :  { %v2714_v1 = vadd.f32 %v650_v62, %v647_v63 }
 0x79e   :  { %v678_v3 = vrot.slane %v2714_v1, 4  ;;  %v861_v57 = vrot.slane %v2714_v1, 6 }
 0x7a0   :  { %679 = vrot.lane.b32.xlu1 %v678_v3, %s2507_s25 }
 0x7de   :  { %v621_v4 = vpop.f32.mrf.mxu0 }
 0x7df   :  { %v622_v8 = vadd.f32 %v621_v4, %v2666_v14 }
 0x7e0   :  { %v2166_v10 = vpop.f32.mrf.mxu0 }
 0x7e1   :  { %659 = vrot.lane.b32.xlu0 %v622_v8, %s2505_s23  ;;  %v1947_v9 = vmul.f32 -1.442695, %v622_v8 }
 0x7e3   :  { %2380 = vpow2.f32 %v1947_v9 }
 0x7f0   :  { %v2381_v15 = vpop.eup %2380 }
 0x7f1   :  { %v655_v16 = vadd.f32 1.0, %v2381_v15 }
 0x7f3   :  { %2382 = vrcp.f32 %v655_v16 }
 0x800   :  { %v2383_v18 = vpop.eup %2382 }
 0x801   :  { %v669_v33 = vsub.f32 1.0, %v2383_v18 }
 0x812   :  { %v680_v11 = vpop.permute.xlu1 %679 }
 0x813   :  { %2176 = vmatmul.mubr.msk.f32.vlgmr.msra.gmra.mxu1 %vm146_vm3, %v680_v11 }
 0x814   :  { %2179 = vmatpush3.msra.mxu1 %v2604_v39  ;;  %2194 = vmatprep.mubr.msk.f32.mxu1 %vm2504_vm0, %v2503_v0 }
 0x815   :  { %2180 = vmatprep.subr.mxu1 %v2503_v0 }
 0x816   :  { %2181 = vmatpush3.msra.mxu1 %v2606_v40 }
 0x817   :  { %2182 = vmatprep.subr.mxu1 %v2503_v0 }
 0x818   :  { %2183 = vmatpush3.msra.mxu1 %v2610_v42 }
 0x819   :  { %2184 = vmatprep.subr.mxu1 %v2503_v0 }
 0x81a   :  { %2185 = vmatpush3.msra.mxu1 %v2614_v45 }
 0x81b   :  { %2186 = vmatprep.subr.mxu1 %v2503_v0 }
 0x81c   :  { %2187 = vmatpush3.msra.mxu1 %v2619_v47 }
 0x81d   :  { %2188 = vmatprep.subr.mxu1 %v2503_v0 }
 0x81e   :  { %2189 = vmatpush3.msra.mxu1 %v2626_v51 }
 0x81f   :  { %2190 = vmatprep.subr.mxu1 %v2503_v0 }
 0x820   :  { %2191 = vmatpush3.msra.mxu1 %v2630_v52 }
 0x821   :  { %2192 = vmatprep.subr.mxu1 %v2503_v0 }
 0x822   :  { %2193 = vmatpush3.msra.mxu1 %v2634_v53 }
 0x823   :  { %2227 = vmatprep.subr.mxu1 %v2503_v0 }
 0x853   :  { %v660_v20 = vpop.permute.xlu0 %659 }
 0x854   :  { %v662_v13 = vmul.f32 %v2383_v18, %v660_v20 }
 0x856   :  { %664 = vrot.lane.b32.xlu1 %v662_v13, %s2506_s24 }
 0x8c8   :  { %v665_v21 = vpop.permute.xlu1 %664 }
 0x8c9   :  { %v667_v22 = vadd.f32 %v665_v21, %v622_v8 }
 0x8cb   :  { %2384 = vtanh.f32 %v667_v22 }
 0x8d3   :  { %v749_v23 = vpop.f32.mrf.mxu1 }
 0x8d4   :  { %v754_v24 = vrot.slane %v749_v23, 2 }
 0x8d5   :  { %v2177_v25 = vpop.f32.mrf.mxu1 }
 0x8d6   :  { %v756_v26 = vadd.f32 %v754_v24, %v2582_v19  ;;  %v675_v19 = vmul.f32 %v2383_v18, %v2697_v48 }
 0x8d8   :  { %v2385_v27 = vpop.eup %2384  ;;  %845 = vrot.lane.b32.xlu0 %v756_v26, %s2505_s23  ;;  %v1950_v28 = vmul.f32 -1.442695, %v756_v26 }
 0x8d9   :  { %671 = vrot.lane.b32.xlu1 %v2385_v27, %s2507_s25 }
 0x8da   :  { %2386 = vpow2.f32 %v1950_v28 }
 0x8dc   :  { %757 = vrot.lane.b32.xlu0 %v2714_v1, %s2507_s25 }
 0x8e7   :  { %v2387_v29 = vpop.eup %2386 }
 0x8e8   :  { %v841_v30 = vadd.f32 1.0, %v2387_v29 }
 0x8ea   :  { %2388 = vrcp.f32 %v841_v30 }
 0x8f7   :  { %v2389_v31 = vpop.eup %2388 }
 0x8f8   :  { %v855_v56 = vsub.f32 1.0, %v2389_v31  ;;  %v863_v59 = vmul.f32 %v2389_v31, %v861_v57 }
 0x94a   :  { %v846_v32 = vpop.permute.xlu0 %845 }
 0x94b   :  { %v848_v34 = vmul.f32 %v2389_v31, %v846_v32  ;;  %v672_v35 = vpop.permute.xlu1 %671 }
 0x94c   :  { %v674_v36 = vmul.f32 %v672_v35, %v669_v33 }
 0x94d   :  { %850 = vrot.lane.b32.xlu1 %v848_v34, %s2506_s24 }
 0x94e   :  { %v2747_v37 = vadd.f32 %v675_v19, %v674_v36  ;;  %v758_v41 = vpop.permute.xlu0 %757 }
 0x950   :  { %v761_v38 = vrot.slane %v2747_v37, 4 }
 0x952   :  { %v763_v43 = vsel %vm146_vm3, %v758_v41, %v761_v38 }
 0x953   :  { %v765_v44 = vrot.slane %v763_v43, 4 }
 0x955   :  { %2195 = vmatmul.mubr.msk.f32.vlgmr.msra.gmra.mxu1 %vm338_vm4, %v765_v44 }
 0x956   :  { %2228 = vmatpush3.msra.mxu1 %v2535_v2  ;;  %2235 = vmatprep.mubr.msk.f32.mxu1 %vm2504_vm0, %v2503_v0 }
 0x957   :  { %2229 = vmatprep.subr.mxu1 %v2503_v0 }
 0x958   :  { %2230 = vmatpush3.msra.mxu1 %v2544_v5 }
 0x959   :  { %2231 = vmatprep.subr.mxu1 %v2503_v0 }
 0x95a   :  { %2232 = vmatpush3.msra.mxu1 %v2547_v6 }
 0x95b   :  { %2233 = vmatprep.subr.mxu1 %v2503_v0 }
 0x95c   :  { %2234 = vmatpush3.msra.mxu1 %v2552_v7 }
 0x95d   :  { %2238 = vmatprep.subr.mxu1 %v2503_v0 }
 0x9bf   :  { %v851_v46 = vpop.permute.xlu1 %850 }
 0x9c0   :  { %v853_v48 = vadd.f32 %v851_v46, %v756_v26 }
 0x9c2   :  { %2390 = vtanh.f32 %v853_v48 }
 0x9cf   :  { %v2391_v49 = vpop.eup %2390 }
 0x9d0   :  { %857 = vrot.lane.b32.xlu0 %v2391_v49, %s2507_s25 }
 0xa15   :  { %v834_v50 = vpop.f32.mrf.mxu1 }
 0xa16   :  { %v835_v54 = vadd.f32 %v834_v50, %v2666_v14 }
 0xa17   :  { %v2196_v55 = vpop.f32.mrf.mxu1 }
 0xa18   :  { %872 = vrot.lane.b32.xlu0 %v835_v54, %s2505_s23  ;;  %v1951_v63 = vmul.f32 -1.442695, %v835_v54 }
 0xa1a   :  { %2392 = vpow2.f32 %v1951_v63 }
 0xa27   :  { %v2393_v3 = vpop.eup %2392 }
 0xa28   :  { %v868_v4 = vadd.f32 1.0, %v2393_v3 }
 0xa2a   :  { %2394 = vrcp.f32 %v868_v4 }
 0xa37   :  { %v2395_v8 = vpop.eup %2394 }
 0xa38   :  { %v882_v21 = vsub.f32 1.0, %v2395_v8  ;;  %v888_v23 = vmul.f32 %v2395_v8, %v2747_v37 }
 0xa42   :  { %v858_v58 = vpop.permute.xlu0 %857 }
 0xa43   :  { %v860_v60 = vmul.f32 %v858_v58, %v855_v56 }
 0xa45   :  { %v2766_v61 = vadd.f32 %v863_v59, %v860_v60 }
 0xa47   :  { %v891_v62 = vrot.slane %v2766_v61, 6 }
 0xa49   :  { %892 = vrot.lane.b32.xlu1 %v891_v62, %s2507_s25 }
 0xa8a   :  { %v873_v10 = vpop.permute.xlu0 %872 }
 0xa8b   :  { %v875_v11 = vmul.f32 %v2395_v8, %v873_v10 }
 0xa8d   :  { %877 = vrot.lane.b32.xlu1 %v875_v11, %s2506_s24 }
 0xa91   :  { %967 = vrot.lane.b32.xlu1 %v2766_v61, %s2507_s25 }
 0xabb   :  { %v893_v1 = vpop.permute.xlu1 %892 }
 0xabc   :  { %2206 = vmatmul.mubr.msk.f32.vlgmr.msra.gmra.mxu0 %vm146_vm3, %v893_v1 }
 0xabd   :  { %2209 = vmatpush3.msra.mxu0 %v2604_v39  ;;  %2224 = vmatprep.mubr.msk.f32.mxu0 %vm2504_vm0, %v2503_v0 }
 0xabe   :  { %2210 = vmatprep.subr.mxu0 %v2503_v0 }
 0xabf   :  { %2211 = vmatpush3.msra.mxu0 %v2606_v40 }
 0xac0   :  { %2212 = vmatprep.subr.mxu0 %v2503_v0 }
 0xac1   :  { %2213 = vmatpush3.msra.mxu0 %v2610_v42 }
 0xac2   :  { %2214 = vmatprep.subr.mxu0 %v2503_v0 }
 0xac3   :  { %2215 = vmatpush3.msra.mxu0 %v2614_v45 }
 0xac4   :  { %2216 = vmatprep.subr.mxu0 %v2503_v0 }
 0xac5   :  { %2217 = vmatpush3.msra.mxu0 %v2619_v47 }
 0xac6   :  { %2218 = vmatprep.subr.mxu0 %v2503_v0 }
 0xac7   :  { %2219 = vmatpush3.msra.mxu0 %v2626_v51 }
 0xac8   :  { %2220 = vmatprep.subr.mxu0 %v2503_v0 }
 0xac9   :  { %2221 = vmatpush3.msra.mxu0 %v2630_v52 }
 0xaca   :  { %2222 = vmatprep.subr.mxu0 %v2503_v0 }
 0xacb   :  { %2223 = vmatpush3.msra.mxu0 %v2634_v53 }
 0xacc   :  { %2257 = vmatprep.subr.mxu0 %v2503_v0 }
 0xaff   :  { %v878_v9 = vpop.permute.xlu1 %877 }
 0xb00   :  { %v880_v15 = vadd.f32 %v878_v9, %v835_v54 }
 0xb02   :  { %2396 = vtanh.f32 %v880_v15 }
 0xb03   :  { %v968_v27 = vpop.permute.xlu1 %967 }
 0xb0f   :  { %v2397_v16 = vpop.eup %2396 }
 0xb10   :  { %884 = vrot.lane.b32.xlu0 %v2397_v16, %s2507_s25 }
 0xb7c   :  { %v962_v18 = vpop.f32.mrf.mxu0 }
 0xb7d   :  { %v966_v20 = vadd.f32 %v962_v18, %v2580_v17 }
 0xb7e   :  { %v2207_v13 = vpop.f32.mrf.mxu0 }
 0xb7f   :  { %1055 = vrot.lane.b32.xlu0 %v966_v20, %s2505_s23  ;;  %v1954_v30 = vmul.f32 -1.442695, %v966_v20 }
 0xb81   :  { %2398 = vpow2.f32 %v1954_v30 }
 0xb82   :  { %v885_v22 = vpop.permute.xlu0 %884 }
 0xb83   :  { %v887_v24 = vmul.f32 %v885_v22, %v882_v21 }
 0xb85   :  { %v2798_v25 = vadd.f32 %v888_v23, %v887_v24 }
 0xb87   :  { %v971_v26 = vrot.slane %v2798_v25, 2 }
 0xb89   :  { %v973_v28 = vsel %vm146_vm3, %v968_v27, %v971_v26 }
 0xb8a   :  { %v975_v29 = vrot.slane %v973_v28, 6 }
 0xb8c   :  { %2225 = vmatmul.mubr.msk.f32.vlgmr.msra.gmra.mxu0 %vm338_vm4, %v975_v29 }
 0xb8d   :  { %2258 = vmatpush3.msra.mxu0 %v2535_v2  ;;  %2265 = vmatprep.mubr.msk.f32.mxu0 %vm2504_vm0, %v2503_v0 }
 0xb8e   :  { %2259 = vmatprep.subr.mxu0 %v2503_v0  ;;  %v2399_v31 = vpop.eup %2398 }
 0xb8f   :  { %2260 = vmatpush3.msra.mxu0 %v2544_v5  ;;  %v1051_v32 = vadd.f32 1.0, %v2399_v31 }
 0xb90   :  { %2261 = vmatprep.subr.mxu0 %v2503_v0 }
 0xb91   :  { %2262 = vmatpush3.msra.mxu0 %v2547_v6  ;;  %2400 = vrcp.f32 %v1051_v32 }
 0xb92   :  { %2263 = vmatprep.subr.mxu0 %v2503_v0 }
 0xb93   :  { %2264 = vmatpush3.msra.mxu0 %v2552_v7 }
 0xb94   :  { %2268 = vmatprep.subr.mxu0 %v2503_v0 }
 0xb9e   :  { %v2401_v33 = vpop.eup %2400 }
 0xb9f   :  { %v1065_v49 = vsub.f32 1.0, %v2401_v33  ;;  %v1072_v54 = vmul.f32 %v2401_v33, %v891_v62 }
 0xbf1   :  { %v1056_v34 = vpop.permute.xlu0 %1055 }
 0xbf2   :  { %v1058_v35 = vmul.f32 %v2401_v33, %v1056_v34 }
 0xbf4   :  { %1060 = vrot.lane.b32.xlu1 %v1058_v35, %s2506_s24 }
 0xc4c   :  { %v1044_v19 = vpop.f32.mrf.mxu0 }
 0xc4d   :  { %v1045_v43 = vadd.f32 %v1044_v19, %v2666_v14 }
 0xc4e   :  { %v2226_v36 = vpop.f32.mrf.mxu0 }
 0xc4f   :  { %v1955_v44 = vmul.f32 -1.442695, %v1045_v43 }
 0xc66   :  { %v1061_v37 = vpop.permute.xlu1 %1060 }
 0xc67   :  { %v1063_v38 = vadd.f32 %v1061_v37, %v966_v20 }
 0xc69   :  { %2402 = vtanh.f32 %v1063_v38 }
 0xc6a   :  { %2404 = vpow2.f32 %v1955_v44 }
 0xc76   :  { %v2403_v41 = vpop.eup %2402 }
 0xc77   :  { %1067 = vrot.lane.b32.xlu0 %v2403_v41, %s2507_s25  ;;  %v2405_v46 = vpop.eup %2404 }
 0xc78   :  { %v1077_v48 = vadd.f32 1.0, %v2405_v46 }
 0xc7a   :  { %2406 = vrcp.f32 %v1077_v48 }
 0xc7b   :  { %1081 = vrot.lane.b32.xlu0 %v1045_v43, %s2505_s23 }
 0xc87   :  { %v2407_v58 = vpop.eup %2406 }
 0xc88   :  { %v1091_v3 = vsub.f32 1.0, %v2407_v58  ;;  %v1097_v8 = vmul.f32 %v2407_v58, %v2798_v25 }
 0xce9   :  { %v1068_v50 = vpop.permute.xlu0 %1067 }
 0xcea   :  { %v1070_v55 = vmul.f32 %v1068_v50, %v1065_v49 }
 0xcec   :  { %v2819_v56 = vadd.f32 %v1072_v54, %v1070_v55 }
 0xced   :  { %v1082_v57 = vpop.permute.xlu0 %1081 }
 0xcee   :  { %1100 = vrot.lane.b32.xlu1 %v2819_v56, %s2507_s25  ;;  %v1084_v59 = vmul.f32 %v2407_v58, %v1082_v57  ;;  %v1276_v33 = vrot.slane %v2819_v56, 6 }
 0xcf2   :  { %1086 = vrot.lane.b32.xlu1 %v1084_v59, %s2506_s24 }
 0xd60   :  { %v1101_v60 = vpop.permute.xlu1 %1100 }
 0xd61   :  { %2236 = vmatmul.mubr.msk.f32.vlgmr.msra.gmra.mxu1 %vm146_vm3, %v1101_v60 }
 0xd62   :  { %2239 = vmatpush3.msra.mxu1 %v2604_v39  ;;  %2254 = vmatprep.mubr.msk.f32.mxu1 %vm2504_vm0, %v2503_v0 }
 0xd63   :  { %2240 = vmatprep.subr.mxu1 %v2503_v0 }
 0xd64   :  { %v1087_v61 = vpop.permute.xlu1 %1086  ;;  %2241 = vmatpush3.msra.mxu1 %v2606_v40 }
 0xd65   :  { %v1089_v62 = vadd.f32 %v1087_v61, %v1045_v43  ;;  %2242 = vmatprep.subr.mxu1 %v2503_v0 }
 0xd66   :  { %2243 = vmatpush3.msra.mxu1 %v2610_v42 }
 0xd67   :  { %2408 = vtanh.f32 %v1089_v62  ;;  %2244 = vmatprep.subr.mxu1 %v2503_v0 }
 0xd68   :  { %2245 = vmatpush3.msra.mxu1 %v2614_v45 }
 0xd69   :  { %2246 = vmatprep.subr.mxu1 %v2503_v0 }
 0xd6a   :  { %2247 = vmatpush3.msra.mxu1 %v2619_v47 }
 0xd6b   :  { %2248 = vmatprep.subr.mxu1 %v2503_v0 }
 0xd6c   :  { %2249 = vmatpush3.msra.mxu1 %v2626_v51 }
 0xd6d   :  { %2250 = vmatprep.subr.mxu1 %v2503_v0 }
 0xd6e   :  { %2251 = vmatpush3.msra.mxu1 %v2630_v52 }
 0xd6f   :  { %2252 = vmatprep.subr.mxu1 %v2503_v0 }
 0xd70   :  { %2253 = vmatpush3.msra.mxu1 %v2634_v53 }
 0xd71   :  { %2287 = vmatprep.subr.mxu1 %v2503_v0 }
 0xd74   :  { %v2409_v63 = vpop.eup %2408 }
 0xd75   :  { %1093 = vrot.lane.b32.xlu0 %v2409_v63, %s2507_s25 }
 0xde7   :  { %v1094_v4 = vpop.permute.xlu0 %1093 }
 0xde8   :  { %v1096_v10 = vmul.f32 %v1094_v4, %v1091_v3 }
 0xdea   :  { %v2845_v11 = vadd.f32 %v1097_v8, %v1096_v10 }
 0xdec   :  { %v1179_v1 = vsel %vm146_vm3, %v1101_v60, %v2845_v11 }
 0xded   :  { %2255 = vmatmul.mubr.msk.f32.vlgmr.msra.gmra.mxu1 %vm338_vm4, %v1179_v1 }
 0xdee   :  { %2288 = vmatpush3.msra.mxu1 %v2535_v2  ;;  %2295 = vmatprep.mubr.msk.f32.mxu1 %vm2504_vm0, %v2503_v0 }
 0xdef   :  { %2289 = vmatprep.subr.mxu1 %v2503_v0 }
 0xdf0   :  { %2290 = vmatpush3.msra.mxu1 %v2544_v5 }
 0xdf1   :  { %2291 = vmatprep.subr.mxu1 %v2503_v0 }
 0xdf2   :  { %2292 = vmatpush3.msra.mxu1 %v2547_v6 }
 0xdf3   :  { %2293 = vmatprep.subr.mxu1 %v2503_v0 }
 0xdf4   :  { %2294 = vmatpush3.msra.mxu1 %v2552_v7 }
 0xdf5   :  { %2298 = vmatprep.subr.mxu1 %v2503_v0 }
 0xe21   :  { %v1170_v9 = vpop.f32.mrf.mxu1 }
 0xe22   :  { %v1175_v15 = vrot.slane %v1170_v9, 6 }
 0xe23   :  { %v2237_v2 = vpop.f32.mrf.mxu1 }
 0xe24   :  { %v1177_v16 = vadd.f32 %v1175_v15, %v2580_v17 }
 0xe26   :  { %1260 = vrot.lane.b32.xlu1 %v1177_v16, %s2505_s23  ;;  %v1958_v18 = vmul.f32 -1.442695, %v1177_v16 }
 0xe28   :  { %2410 = vpow2.f32 %v1958_v18 }
 0xe35   :  { %v2411_v5 = vpop.eup %2410 }
 0xe36   :  { %v1256_v20 = vadd.f32 1.0, %v2411_v5 }
 0xe38   :  { %2412 = vrcp.f32 %v1256_v20 }
 0xe45   :  { %v2413_v13 = vpop.eup %2412 }
 0xe46   :  { %v1270_v34 = vsub.f32 1.0, %v2413_v13  ;;  %v1278_v19 = vmul.f32 %v2413_v13, %v1276_v33 }
 0xe98   :  { %v1261_v6 = vpop.permute.xlu1 %1260 }
 0xe99   :  { %v1263_v21 = vmul.f32 %v2413_v13, %v1261_v6 }
 0xe9b   :  { %1265 = vrot.lane.b32.xlu0 %v1263_v21, %s2506_s24 }
 0xead   :  { %v1249_v7 = vpop.f32.mrf.mxu1 }
 0xeae   :  { %v1250_v22 = vadd.f32 %v1249_v7, %v2666_v14 }
 0xeaf   :  { %v2256_v23 = vpop.f32.mrf.mxu1 }
 0xeb0   :  { %1287 = vrot.lane.b32.xlu0 %v1250_v22, %s2505_s23  ;;  %v1959_v24 = vmul.f32 -1.442695, %v1250_v22 }
 0xeb2   :  { %2414 = vpow2.f32 %v1959_v24 }
 0xebf   :  { %v2415_v26 = vpop.eup %2414 }
 0xec0   :  { %v1283_v28 = vadd.f32 1.0, %v2415_v26 }
 0xf0d   :  { %v1266_v25 = vpop.permute.xlu0 %1265 }
 0xf0e   :  { %v1268_v27 = vadd.f32 %v1266_v25, %v1177_v16 }
 0xf10   :  { %2416 = vtanh.f32 %v1268_v27 }
 0xf11   :  { %2418 = vrcp.f32 %v1283_v28 }
 0xf1d   :  { %v2417_v29 = vpop.eup %2416 }
 0xf1e   :  { %1272 = vrot.lane.b32.xlu1 %v2417_v29, %s2507_s25  ;;  %v2419_v30 = vpop.eup %2418 }
 0xf1f   :  { %v1297_v48 = vsub.f32 1.0, %v2419_v30  ;;  %v1303_v50 = vmul.f32 %v2419_v30, %v2845_v11 }
 0xf22   :  { %v1288_v31 = vpop.permute.xlu0 %1287 }
 0xf23   :  { %v1290_v32 = vmul.f32 %v2419_v30, %v1288_v31 }
 0xf25   :  { %1292 = vrot.lane.b32.xlu0 %v1290_v32, %s2506_s24 }
 0xf90   :  { %v1273_v35 = vpop.permute.xlu1 %1272 }
 0xf91   :  { %v1275_v36 = vmul.f32 %v1273_v35, %v1270_v34  ;;  %v2452_v34 = vld [vmem:[#allocation2 + $0x60] sm:$0xff] }
 0xf93   :  { %v2868_v37 = vadd.f32 %v1278_v19, %v1275_v36  ;;  %v2453_v19 = vld [vmem:[#allocation2 + $0x58] sm:$0xff] }
 0xf95   :  { %1385 = vrot.lane.b32.xlu0 %v2868_v37, %s2507_s25  ;;  %v1306_v38 = vrot.slane %v2868_v37, 2  ;;  %v1489_v24 = vrot.slane %v2868_v37, 6  ;;  %v2454_v37 = vld [vmem:[#allocation2 + $0x50] sm:$0xff] }
 0xf97   :  { %1307 = vrot.lane.b32.xlu1 %v1306_v38, %s2507_s25  ;;  %v1293_v41 = vpop.permute.xlu0 %1292 }
 0xf98   :  { %v1295_v43 = vadd.f32 %v1293_v41, %v1250_v22 }
 0xf9a   :  { %2420 = vtanh.f32 %v1295_v43 }
 0xfa7   :  { %v2421_v44 = vpop.eup %2420 }
 0xfa8   :  { %1299 = vrot.lane.b32.xlu1 %v2421_v44, %s2507_s25 }
0x1007   :  { %v1386_v57 = vpop.permute.xlu0 %1385 }
0x1009   :  { %v1308_v46 = vpop.permute.xlu1 %1307 }
0x100a   :  { %2266 = vmatmul.mubr.msk.f32.vlgmr.msra.gmra.mxu0 %vm146_vm3, %v1308_v46 }
0x100b   :  { %2269 = vmatpush3.msra.mxu0 %v2604_v39  ;;  %2284 = vmatprep.mubr.msk.f32.mxu0 %vm2504_vm0, %v2503_v0 }
0x100c   :  { %2270 = vmatprep.subr.mxu0 %v2503_v0 }
0x100d   :  { %2271 = vmatpush3.msra.mxu0 %v2606_v40 }
0x100e   :  { %2272 = vmatprep.subr.mxu0 %v2503_v0 }
0x100f   :  { %2273 = vmatpush3.msra.mxu0 %v2610_v42 }
0x1010   :  { %2274 = vmatprep.subr.mxu0 %v2503_v0 }
0x1011   :  { %2275 = vmatpush3.msra.mxu0 %v2614_v45 }
0x1012   :  { %2276 = vmatprep.subr.mxu0 %v2503_v0 }
0x1013   :  { %2277 = vmatpush3.msra.mxu0 %v2619_v47 }
0x1014   :  { %2278 = vmatprep.subr.mxu0 %v2503_v0 }
0x1015   :  { %2279 = vmatpush3.msra.mxu0 %v2626_v51 }
0x1016   :  { %2280 = vmatprep.subr.mxu0 %v2503_v0 }
0x1017   :  { %2281 = vmatpush3.msra.mxu0 %v2630_v52 }
0x1018   :  { %2282 = vmatprep.subr.mxu0 %v2503_v0 }
0x1019   :  { %2283 = vmatpush3.msra.mxu0 %v2634_v53 }
0x101a   :  { %v1300_v49 = vpop.permute.xlu1 %1299  ;;  %2317 = vmatprep.subr.mxu0 %v2503_v0 }
0x101b   :  { %v1302_v54 = vmul.f32 %v1300_v49, %v1297_v48 }
0x101d   :  { %v2895_v55 = vadd.f32 %v1303_v50, %v1302_v54 }
0x101f   :  { %v1389_v56 = vrot.slane %v2895_v55, 6 }
0x1021   :  { %v1391_v58 = vsel %vm146_vm3, %v1386_v57, %v1389_v56 }
0x1022   :  { %v1393_v59 = vrot.slane %v1391_v58, 2 }
0x1024   :  { %2285 = vmatmul.mubr.msk.f32.vlgmr.msra.gmra.mxu0 %vm338_vm4, %v1393_v59 }
0x1025   :  { %2318 = vmatpush3.msra.mxu0 %v2604_v39  ;;  %2333 = vmatprep.mubr.msk.f32.mxu0 %vm2504_vm0, %v2503_v0 }
0x1026   :  { %2319 = vmatprep.subr.mxu0 %v2503_v0 }
0x1027   :  { %2320 = vmatpush3.msra.mxu0 %v2606_v40 }
0x1028   :  { %2321 = vmatprep.subr.mxu0 %v2503_v0 }
0x1029   :  { %2322 = vmatpush3.msra.mxu0 %v2610_v42 }
0x102a   :  { %2323 = vmatprep.subr.mxu0 %v2503_v0 }
0x102b   :  { %2324 = vmatpush3.msra.mxu0 %v2614_v45 }
0x102c   :  { %2325 = vmatprep.subr.mxu0 %v2503_v0 }
0x102d   :  { %2326 = vmatpush3.msra.mxu0 %v2619_v47 }
0x102e   :  { %2327 = vmatprep.subr.mxu0 %v2503_v0 }
0x102f   :  { %2328 = vmatpush3.msra.mxu0 %v2626_v51 }
0x1030   :  { %2329 = vmatprep.subr.mxu0 %v2503_v0 }
0x1031   :  { %2330 = vmatpush3.msra.mxu0 %v2630_v52 }
0x1032   :  { %2331 = vmatprep.subr.mxu0 %v2503_v0 }
0x1033   :  { %2332 = vmatpush3.msra.mxu0 %v2634_v53 }
0x10ca   :  { %v1377_v39 = vpop.f32.mrf.mxu0 }
0x10cb   :  { %v1382_v40 = vrot.slane %v1377_v39, 4 }
0x10cc   :  { %v2267_v42 = vpop.f32.mrf.mxu0 }
0x10cd   :  { %v1384_v60 = vadd.f32 %v1382_v40, %v2580_v17 }
0x10cf   :  { %1473 = vrot.lane.b32.xlu1 %v1384_v60, %s2505_s23  ;;  %v1962_v3 = vmul.f32 -1.442695, %v1384_v60 }
0x10d1   :  { %2422 = vpow2.f32 %v1962_v3 }
0x10de   :  { %v2423_v4 = vpop.eup %2422 }
0x10df   :  { %v1469_v8 = vadd.f32 1.0, %v2423_v4 }
0x10e1   :  { %2424 = vrcp.f32 %v1469_v8 }
0x10e4   :  { %v1462_v61 = vpop.f32.mrf.mxu0 }
0x10e5   :  { %v1463_v62 = vadd.f32 %v1462_v61, %v2666_v14 }
0x10e6   :  { %v2286_v63 = vpop.f32.mrf.mxu0 }
0x10e7   :  { %1500 = vrot.lane.b32.xlu1 %v1463_v62, %s2505_s23  ;;  %v1963_v10 = vmul.f32 -1.442695, %v1463_v62 }
0x10e9   :  { %2426 = vpow2.f32 %v1963_v10 }
0x10ee   :  { %v2425_v11 = vpop.eup %2424 }
0x10ef   :  { %v1483_v23 = vsub.f32 1.0, %v2425_v11  ;;  %v1491_v26 = vmul.f32 %v2425_v11, %v1489_v24 }
0x10f6   :  { %v2427_v15 = vpop.eup %2426 }
0x10f7   :  { %v1496_v2 = vadd.f32 1.0, %v2427_v15 }
0x10f9   :  { %2428 = vrcp.f32 %v1496_v2 }
0x1106   :  { %v2429_v16 = vpop.eup %2428 }
0x1107   :  { %v1510_v31 = vsub.f32 1.0, %v2429_v16  ;;  %v1516_v35 = vmul.f32 %v2429_v16, %v2895_v55 }
0x1141   :  { %v1474_v1 = vpop.permute.xlu1 %1473 }
0x1142   :  { %v1476_v9 = vmul.f32 %v2425_v11, %v1474_v1 }
0x1144   :  { %1478 = vrot.lane.b32.xlu0 %v1476_v9, %s2506_s24 }
0x1159   :  { %v1501_v18 = vpop.permute.xlu1 %1500 }
0x115a   :  { %v1503_v5 = vmul.f32 %v2429_v16, %v1501_v18 }
0x115c   :  { %1505 = vrot.lane.b32.xlu1 %v1503_v5, %s2506_s24 }
0x11b6   :  { %v1479_v20 = vpop.permute.xlu0 %1478 }
0x11b7   :  { %v1481_v13 = vadd.f32 %v1479_v20, %v1384_v60 }
0x11b9   :  { %2430 = vtanh.f32 %v1481_v13 }
0x11c6   :  { %v2431_v6 = vpop.eup %2430 }
0x11c7   :  { %1485 = vrot.lane.b32.xlu0 %v2431_v6, %s2507_s25 }
0x11ce   :  { %v1506_v21 = vpop.permute.xlu1 %1505 }
0x11cf   :  { %v1508_v7 = vadd.f32 %v1506_v21, %v1463_v62 }
0x11d1   :  { %2432 = vtanh.f32 %v1508_v7 }
0x11de   :  { %v2433_v22 = vpop.eup %2432 }
0x11df   :  { %1512 = vrot.lane.b32.xlu1 %v2433_v22, %s2507_s25 }
0x1239   :  { %v1486_v25 = vpop.permute.xlu0 %1485 }
0x123a   :  { %v1488_v27 = vmul.f32 %v1486_v25, %v1483_v23 }
0x123c   :  { %v2926_v28 = vadd.f32 %v1491_v26, %v1488_v27 }
0x123e   :  { %v1519_v29 = vrot.slane %v2926_v28, 4  ;;  %v1702_v10 = vrot.slane %v2926_v28, 6 }
0x1240   :  { %1520 = vrot.lane.b32.xlu0 %v1519_v29, %s2507_s25 }
0x1244   :  { %1598 = vrot.lane.b32.xlu0 %v2926_v28, %s2507_s25 }
0x1251   :  { %v1513_v30 = vpop.permute.xlu1 %1512 }
0x1252   :  { %v1515_v33 = vmul.f32 %v1513_v30, %v1510_v31 }
0x1254   :  { %v2938_v36 = vadd.f32 %v1516_v35, %v1515_v33  ;;  %v45_v33 = vld [vmem:[#allocation2 + $0x80] sm:$0xff]  ;;  %v42_v35 = vld [vmem:[#allocation2 + $0x68] sm:$0xff] }
0x1256   :  { %v1602_v41 = vrot.slane %v2938_v36, 4 }
0x12b2   :  { %v1521_v32 = vpop.permute.xlu0 %1520 }
0x12b3   :  { %2296 = vmatmul.mubr.msk.f32.vlgmr.msra.gmra.mxu1 %vm146_vm3, %v1521_v32 }
0x12b4   :  { %2299 = vmatpush3.msra.mxu1 %v2452_v34  ;;  %2314 = vmatprep.mubr.msk.f32.mxu1 %vm2504_vm0, %v2503_v0  ;;  %v44_v34 = vld [vmem:[#allocation2 + $0x78] sm:$0xff] }
0x12b5   :  { %2300 = vmatprep.subr.mxu1 %v2503_v0 }
0x12b6   :  { %2301 = vmatpush3.msra.mxu1 %v2453_v19  ;;  %v1599_v38 = vpop.permute.xlu0 %1598 }
0x12b7   :  { %2302 = vmatprep.subr.mxu1 %v2503_v0  ;;  %v1604_v43 = vsel %vm146_vm3, %v1599_v38, %v1602_v41 }
0x12b8   :  { %2303 = vmatpush3.msra.mxu1 %v2454_v37  ;;  %v1606_v44 = vrot.slane %v1604_v43, 4 }
0x12b9   :  { %2304 = vmatprep.subr.mxu1 %v2503_v0 }
0x12ba   :  { %2305 = vmatpush3.msra.mxu1 %v2614_v45 }
0x12bb   :  { %2306 = vmatprep.subr.mxu1 %v2503_v0 }
0x12bc   :  { %2307 = vmatpush3.msra.mxu1 %v2619_v47 }
0x12bd   :  { %2308 = vmatprep.subr.mxu1 %v2503_v0 }
0x12be   :  { %2309 = vmatpush3.msra.mxu1 %v2626_v51 }
0x12bf   :  { %2310 = vmatprep.subr.mxu1 %v2503_v0 }
0x12c0   :  { %2311 = vmatpush3.msra.mxu1 %v2630_v52 }
0x12c1   :  { %2312 = vmatprep.subr.mxu1 %v2503_v0 }
0x12c2   :  { %2313 = vmatpush3.msra.mxu1 %v2634_v53 }
0x12c3   :  { %2315 = vmatmul.mubr.msk.f32.vlgmr.msra.gmra.mxu1 %vm338_vm4, %v1606_v44  ;;  %2336 = vmatprep.subr.mxu1 %v2503_v0 }
0x12c4   :  { %2344 = vmatprep.mubr.msk.f32.mxu1 %vm2504_vm0, %v2503_v0  ;;  %2337 = vmatpush3.msra.mxu1 %v45_v33 }
0x12c5   :  { %2338 = vmatprep.subr.mxu1 %v2503_v0 }
0x12c6   :  { %2339 = vmatpush3.msra.mxu1 %v44_v34 }
0x12c7   :  { %2340 = vmatprep.subr.mxu1 %v2503_v0 }
0x1373   :  { %v1590_v45 = vpop.f32.mrf.mxu1 }
0x1374   :  { %v1595_v47 = vrot.slane %v1590_v45, 2  ;;  %v1840_v45 = vsub.s32 4, %v2574_v12 }
0x1375   :  { %v2297_v46 = vpop.f32.mrf.mxu1 }
0x1376   :  { %v1597_v51 = vadd.f32 %v1595_v47, %v2580_v17  ;;  %v2455_v47 = vld [vmem:[#allocation2 + $0x88] sm:$0x1f] }
0x1377   :  { %v1841_v46 = vrot.slane %v2455_v47, %v1840_v45 }
0x1378   :  { %1686 = vrot.lane.b32.xlu1 %v1597_v51, %s2505_s23  ;;  %v1966_v53 = vmul.f32 -1.442695, %v1597_v51 }
0x137a   :  { %2434 = vpow2.f32 %v1966_v53 }
0x1383   :  { %v1675_v52 = vpop.f32.mrf.mxu1 }
0x1384   :  { %v1676_v48 = vadd.f32 %v1675_v52, %v2666_v14 }
0x1385   :  { %v2316_v49 = vpop.f32.mrf.mxu1 }
0x1386   :  { %1713 = vrot.lane.b32.xlu0 %v1676_v48, %s2505_s23  ;;  %v1967_v50 = vmul.f32 -1.442695, %v1676_v48 }
0x1387   :  { %v2435_v54 = vpop.eup %2434 }
0x1388   :  { %2436 = vpow2.f32 %v1967_v50  ;;  %v1682_v55 = vadd.f32 1.0, %v2435_v54 }
0x138a   :  { %2438 = vrcp.f32 %v1682_v55 }
0x1395   :  { %v2437_v56 = vpop.eup %2436 }
0x1396   :  { %v1709_v57 = vadd.f32 1.0, %v2437_v56 }
0x1397   :  { %v2439_v58 = vpop.eup %2438 }
0x1398   :  { %2440 = vrcp.f32 %v1709_v57  ;;  %v1696_v8 = vsub.f32 1.0, %v2439_v58  ;;  %v1704_v1 = vmul.f32 %v2439_v58, %v1702_v10 }
0x13a5   :  { %v2441_v39 = vpop.eup %2440 }
0x13a6   :  { %v1723_v16 = vsub.f32 1.0, %v2441_v39  ;;  %v1729_v5 = vmul.f32 %v2441_v39, %v2938_v36 }
0x13ea   :  { %v1687_v59 = vpop.permute.xlu1 %1686 }
0x13eb   :  { %v1689_v17 = vmul.f32 %v2439_v58, %v1687_v59 }
0x13ed   :  { %1691 = vrot.lane.b32.xlu1 %v1689_v17, %s2506_s24 }
0x13f8   :  { %v1714_v40 = vpop.permute.xlu0 %1713 }
0x13f9   :  { %v1716_v42 = vmul.f32 %v2441_v39, %v1714_v40 }
0x13fb   :  { %1718 = vrot.lane.b32.xlu0 %v1716_v42, %s2506_s24 }
0x145f   :  { %v1692_v60 = vpop.permute.xlu1 %1691 }
0x1460   :  { %v1694_v61 = vadd.f32 %v1692_v60, %v1597_v51 }
0x1462   :  { %2442 = vtanh.f32 %v1694_v61 }
0x146d   :  { %v1719_v62 = vpop.permute.xlu0 %1718 }
0x146e   :  { %v1721_v63 = vadd.f32 %v1719_v62, %v1676_v48 }
0x146f   :  { %v2443_v3 = vpop.eup %2442 }
0x1470   :  { %2444 = vtanh.f32 %v1721_v63  ;;  %1698 = vrot.lane.b32.xlu1 %v2443_v3, %s2507_s25 }
0x147d   :  { %v2445_v4 = vpop.eup %2444 }
0x147e   :  { %1725 = vrot.lane.b32.xlu0 %v2445_v4, %s2507_s25 }
0x14e2   :  { %v1699_v11 = vpop.permute.xlu1 %1698 }
0x14e3   :  { %v1701_v9 = vmul.f32 %v1699_v11, %v1696_v8 }
0x14e5   :  { %v1705_v15 = vadd.f32 %v1704_v1, %v1701_v9 }
0x14e7   :  { %1732 = vrot.lane.b32.xlu1 %v1705_v15, %s2507_s25 }
0x14f0   :  { %v1726_v2 = vpop.permute.xlu0 %1725 }
0x14f1   :  { %v1728_v18 = vmul.f32 %v1726_v2, %v1723_v16 }
0x14f3   :  { %v1730_v20 = vadd.f32 %v1729_v5, %v1728_v18 }
0x14f5   :  { %v1736_v13 = vrot.slane %v1730_v20, 2 }
0x1559   :  { %v1733_v6 = vpop.permute.xlu1 %1732 }
0x155a   :  { %v1738_v21 = vsel %vm146_vm3, %v1733_v6, %v1736_v13 }
0x155b   :  { %v1740_v7 = vrot.slane %v1738_v21, 6 }
0x155d   :  { %2334 = vmatmul.mubr.msk.f32.vlgmr.msra.gmra.mxu0 %vm338_vm4, %v1740_v7 }
0x161d   :  { %v1809_v22 = vpop.f32.mrf.mxu0 }
0x161e   :  { %v1810_v23 = vadd.f32 %v1809_v22, %v2666_v14  ;;  %v43_v14 = vld [vmem:[#allocation2 + $0x70] sm:$0xff] }
0x161f   :  { %v2335_v24 = vpop.f32.mrf.mxu0  ;;  %2341 = vmatpush3.msra.mxu1 %v43_v14 }
0x1620   :  { %1820 = vrot.lane.b32.xlu0 %v1810_v23, %s2505_s23  ;;  %v1969_v25 = vmul.f32 -1.442695, %v1810_v23  ;;  %2342 = vmatprep.subr.mxu1 %v2503_v0 }
0x1621   :  { %2343 = vmatpush3.msra.mxu1 %v42_v35 }
0x1622   :  { %2446 = vpow2.f32 %v1969_v25 }
0x162f   :  { %v2447_v26 = vpop.eup %2446 }
0x1630   :  { %v1816_v27 = vadd.f32 1.0, %v2447_v26 }
0x1632   :  { %2448 = vrcp.f32 %v1816_v27 }
0x163f   :  { %v2449_v28 = vpop.eup %2448 }
0x1640   :  { %v1830_v36 = vsub.f32 1.0, %v2449_v28  ;;  %v1836_v38 = vmul.f32 %v2449_v28, %v1730_v20 }
0x1692   :  { %v1821_v29 = vpop.permute.xlu0 %1820 }
0x1693   :  { %v1823_v30 = vmul.f32 %v2449_v28, %v1821_v29 }
0x1695   :  { %1825 = vrot.lane.b32.xlu1 %v1823_v30, %s2506_s24 }
0x1707   :  { %v1826_v31 = vpop.permute.xlu1 %1825 }
0x1708   :  { %v1828_v32 = vadd.f32 %v1826_v31, %v1810_v23 }
0x170a   :  { %2450 = vtanh.f32 %v1828_v32 }
0x1717   :  { %v2451_v19 = vpop.eup %2450 }
0x1718   :  { %1832 = vrot.lane.b32.xlu0 %v2451_v19, %s2507_s25 }
0x178a   :  { %v1833_v37 = vpop.permute.xlu0 %1832 }
0x178b   :  { %v1835_v41 = vmul.f32 %v1833_v37, %v1830_v36 }
0x178d   :  { %v1837_v43 = vadd.f32 %v1836_v38, %v1835_v41 }
0x178f   :  { %1843 = vrot.lane.b32.xlu1 %v1837_v43, %s2507_s25 }
0x1801   :  { %v1844_v44 = vpop.permute.xlu1 %1843 }
0x1802   :  { %2345 = vmatmul.mubr.msk.f32.vlgmr.msra.gmra.mxu1 %vm146_vm3, %v1844_v44 }
0x18c2   :  { %v1913_v0 = vpop.f32.mrf.mxu1 }
0x18c3   :  { %v1914_v51 = vadd.f32 %v1913_v0, %v1841_v46 }
0x18c4   :  { %v2346_v52 = vpop.f32.mrf.mxu1 }
0x18c5   :  { %1918 = vst.msk [vmem:[#allocation5] sm:$0x3] %vm1917_vm5, %v1914_v51 }
0x18c6   :  { %2487 = shalt.err (!%p2484_p9)
}
0x18c7   :  { %1928 = dma.vmem_to_hbm [thread:$0]  %s1926_s28, 32, %s2985_s3, [#allocation4]  }
0x18c8   :  { %2498 = dma.done.wait [#allocation4], 32  }
0x18c9   :  { %2499 = vsyncadd [#allocation4], 4294967264 }
0x18ca   :  { %1932 = vsyncpa [#allocation3], 1 }
0x18cb   :  { %1933 = vsyncpa [#allocation4], 1 }

</bundles_post_ra>
